<compile_context>
chip_gen: v7x
topology: tpu7x:2x2x1
jax: 0.10.0
libtpu: 0.0.40
codegen_flags: <defaults>
</compile_context>

<pallas_src>
import math

import jax
import jax.numpy as jnp
from jax.experimental import pallas as pl
from jax.experimental.pallas import tpu as pltpu

D_MODEL = 32     # d_model
N_HEAD = 4       # n_head
SEQ = 8          # sequence length
BATCH = 2        # batch size
LN_EPS = 1e-5    # PyTorch LayerNorm default eps


def _layernorm(x, gamma, beta):
    mu = jnp.mean(x, axis=-1, keepdims=True)
    xc = x - mu
    var = jnp.mean(xc * xc, axis=-1, keepdims=True)
    inv = jax.lax.rsqrt(var + LN_EPS)
    return xc * inv * gamma + beta


def _make_kernel(n_batch, seq, d_model, n_head):
    nl = n_batch * seq
    hd = d_model // n_head
    E = d_model

    def kernel(inp_ref, dif_ref, wa_ref, w2_ref, bias_ref, o_ref, attn_sc):
        # --- unpack the small f32 bias/vector slab (8, 4E) ------------------
        bias = bias_ref[...]
        g1, b1 = bias[0:1, :E], bias[1:2, :E]
        g2, b2 = bias[2:3, :E], bias[3:4, :E]
        bo, bf2 = bias[4:5, :E], bias[5:6, :E]
        b_qkv = bias[6:7, :3 * E]
        bf1 = bias[7:8, :4 * E]

        # --- layout reorder absorbed into the kernel -------------------------
        # (L, N, E) refs -> batch-major (N*L, E) rows via per-batch slices and
        # a sublane (axis-0) concat; all tiles here are a couple of KB.
        x = jnp.concatenate([inp_ref[:, n, :] for n in range(n_batch)], axis=0)
        d = jnp.concatenate([dif_ref[:, n, :] for n in range(n_batch)], axis=0)
        xd = jnp.concatenate([x, d], axis=0)                       # (2*nl, E)

        # norm1 applied to both the query source (x) and key/value source (dif)
        xdn = _layernorm(xd, g1, b1)                               # f32 VPU path

        # --- static slices of the bf16 weight slab ---------------------------
        w_qkv = wa_ref[:, 0:3 * E]          # (E, 3E)  (Wq pre-scaled)
        wo = wa_ref[:, 3 * E:4 * E]         # (E, E)
        w1 = wa_ref[:, 4 * E:8 * E]         # (E, 4E)

        # fused QKV in-projection: one (2nl,E)x(E,3E) MXU pass.
        # NOTE: q is also computed for the dif rows and k/v for the x rows and
        # discarded -- intentional, it is one MXU push either way.
        qkv = jnp.dot(xdn.astype(jnp.bfloat16), w_qkv,
                      preferred_element_type=jnp.float32) + b_qkv
        q = qkv[:nl, 0:E].astype(jnp.bfloat16)          # from x rows (scaled)
        k = qkv[nl:, E:2 * E]                           # keep f32 for transpose
        v = qkv[nl:, 2 * E:3 * E].astype(jnp.bfloat16)  # from dif rows

        # --- attention: per-batch / per-head, all MXU operands bf16 ----------
        for n in range(n_batch):                        # static, tiny unroll
            r = slice(n * seq, (n + 1) * seq)
            kt = k[r, :].T.astype(jnp.bfloat16)         # (E, seq): 1 transpose/batch
            vn = v[r, :]                                # (seq, E) bf16
            for h in range(n_head):
                c = slice(h * hd, (h + 1) * hd)
                s = jnp.dot(q[r, c], kt[c, :],
                            preferred_element_type=jnp.float32)    # (seq, seq)
                # keep the max-shift for safety (small XLU cost; see review #9)
                s = s - jnp.max(s, axis=-1, keepdims=True)
                p = jnp.exp(s)                                      # f32 EUP
                p = p * pl.reciprocal(jnp.sum(p, axis=-1, keepdims=True),
                                      approx=True)
                oh = jnp.dot(p.astype(jnp.bfloat16), vn[:, c],
                             preferred_element_type=jnp.float32)    # (seq, hd)
                # aligned masked write into the per-head lane slice
                attn_sc[r, c] = oh

        # single merged output projection for all batches/heads: one MXU push
        attn = jnp.dot(attn_sc[...].astype(jnp.bfloat16), wo,
                       preferred_element_type=jnp.float32)          # (nl, E)
        out1 = x + attn + bo        # residual 1 (+ out-proj bias; dropout1 = id)

        # feed-forward: linear2(relu(linear1(norm2(out1))))
        on = _layernorm(out1, g2, b2)
        h1 = jnp.dot(on.astype(jnp.bfloat16), w1,
                     preferred_element_type=jnp.float32) + bf1
        h1 = jnp.maximum(h1, 0.0)
        ff = jnp.dot(h1.astype(jnp.bfloat16), w2_ref[...],
                     preferred_element_type=jnp.float32) + bf2

        out = out1 + ff             # (nl, E), residual 2 (dropout2/3 = id)

        # store back in the caller's (L, N, E) layout (two masked stores);
        # a lane-dense relayout would cost more XLU work than it saves here.
        for n in range(n_batch):
            o_ref[:, n, :] = out[n * seq:(n + 1) * seq, :]

    return kernel


def init_params(key, d_model=D_MODEL):
    ks = jax.random.split(key, 8)

    def xavier(k, shape):
        fan_out, fan_in = shape
        lim = (6.0 / (fan_in + fan_out)) ** 0.5
        return jax.random.uniform(k, shape, jnp.float32, -lim, lim)

    in_proj_w = xavier(ks[0], (3 * d_model, d_model))   # torch MHA xavier_uniform_
    wq, wk, wv = jnp.split(in_proj_w, 3, axis=0)
    return {
        "g1": jnp.ones((d_model,), jnp.float32),
        "b1": jnp.zeros((d_model,), jnp.float32),
        "g2": jnp.ones((d_model,), jnp.float32),
        "b2": jnp.zeros((d_model,), jnp.float32),
        "wq": wq, "wk": wk, "wv": wv,                   # (E, E) torch (out, in)
        "bq": jnp.zeros((d_model,), jnp.float32),
        "bk": jnp.zeros((d_model,), jnp.float32),
        "bv": jnp.zeros((d_model,), jnp.float32),
        "wo": xavier(ks[1], (d_model, d_model)),
        "bo": jnp.zeros((d_model,), jnp.float32),
        "w1": xavier(ks[2], (4 * d_model, d_model)),
        "bf1": jax.random.uniform(ks[3], (4 * d_model,), jnp.float32, -0.1, 0.1),
        "w2": xavier(ks[4], (d_model, 4 * d_model)),
        "bf2": jax.random.uniform(ks[5], (d_model,), jnp.float32, -0.1, 0.1),
    }


def pack_params(p, d_model=D_MODEL, n_head=N_HEAD):
    """One-time host-side packing: fold 1/sqrt(head_dim) into Wq/bq, pre-transpose
    weights to (in, out), and pack everything into 3 contiguous arrays:
      w_a  : (E, 8E) bf16  = [Wqkv | Wo | W1]
      w2   : (4E, E) bf16
      bias : (8, 4E) f32   = rows [g1, b1, g2, b2, bo, bf2, bqkv, bf1]
    """
    E = d_model
    scale = 1.0 / math.sqrt(E // n_head)
    w_qkv = jnp.concatenate([p["wq"].T * scale, p["wk"].T, p["wv"].T], axis=1)  # (E,3E)
    w_a = jnp.concatenate([w_qkv, p["wo"].T, p["w1"].T],
                          axis=1).astype(jnp.bfloat16)                          # (E,8E)
    w2 = p["w2"].T.astype(jnp.bfloat16)                                         # (4E,E)

    bias = jnp.zeros((8, 4 * E), jnp.float32)
    bias = bias.at[0, :E].set(p["g1"])
    bias = bias.at[1, :E].set(p["b1"])
    bias = bias.at[2, :E].set(p["g2"])
    bias = bias.at[3, :E].set(p["b2"])
    bias = bias.at[4, :E].set(p["bo"])
    bias = bias.at[5, :E].set(p["bf2"])
    bias = bias.at[6, :3 * E].set(
        jnp.concatenate([p["bq"] * scale, p["bk"], p["bv"]]))
    bias = bias.at[7, :4 * E].set(p["bf1"])
    return {"w_a": w_a, "w2": w2, "bias": bias}


@jax.jit
def cross_att_forward(inp, dif, packed):
    """inp, dif: (L, N, E) as in torch MultiheadAttention (batch_first=False).
    The wrapper is a bare pallas_call: all layout work happens in-kernel."""
    L, N, E = inp.shape

    def vmem():
        return pl.BlockSpec(memory_space=pltpu.MemorySpace.VMEM)

    return pl.pallas_call(
        _make_kernel(N, L, E, N_HEAD),
        out_shape=jax.ShapeDtypeStruct((L, N, E), jnp.float32),
        in_specs=[vmem() for _ in range(5)],
        out_specs=vmem(),
        scratch_shapes=[pltpu.VMEM((N * L, E), jnp.float32)],
    )(inp, dif, packed["w_a"], packed["w2"], packed["bias"])
    # TODO(synk): if this layer is ever called over many independent (inp, dif)
    # instances, add a leading "parallel" grid axis over instances so v7x's
    # second TensorCore can take half; at a single (2, 8, 32) problem one call
    # on one core is the right shape.


def cross_att_reference(inp, dif, p):
    """Pure-JAX f32 reference mirroring the PyTorch forward (eval mode)."""
    def ln(v, g, b):
        mu = v.mean(-1, keepdims=True)
        var = ((v - mu) ** 2).mean(-1, keepdims=True)
        return (v - mu) / jnp.sqrt(var + LN_EPS) * g + b

    L, N, E = inp.shape
    hd = E // N_HEAD
    xn = ln(inp, p["g1"], p["b1"])
    dn = ln(dif, p["g1"], p["b1"])
    q = xn @ p["wq"].T + p["bq"]
    k = dn @ p["wk"].T + p["bk"]
    v = dn @ p["wv"].T + p["bv"]
    qh = q.reshape(L, N, N_HEAD, hd) / (hd ** 0.5)
    kh = k.reshape(L, N, N_HEAD, hd)
    vh = v.reshape(L, N, N_HEAD, hd)
    s = jnp.einsum("lnhd,mnhd->nhlm", qh, kh)
    a = jax.nn.softmax(s, axis=-1)
    o = jnp.einsum("nhlm,mnhd->lnhd", a, vh).reshape(L, N, E)
    attn = o @ p["wo"].T + p["bo"]
    out1 = inp + attn
    on = ln(out1, p["g2"], p["b2"])
    ff = jnp.maximum(on @ p["w1"].T + p["bf1"], 0.0) @ p["w2"].T + p["bf2"]
    return out1 + ff


if __name__ == "__main__":
    key = jax.random.PRNGKey(0)
    k_in, k_dif, k_par = jax.random.split(key, 3)
    inp = jax.random.normal(k_in, (SEQ, BATCH, D_MODEL), jnp.float32)
    dif = jax.random.normal(k_dif, (SEQ, BATCH, D_MODEL), jnp.float32)
    params = init_params(k_par)
    packed = pack_params(params)          # one-time host-side packing

    out = cross_att_forward(inp, dif, packed)
    out = jax.block_until_ready(out)

    ref = cross_att_reference(inp, dif, params)
    assert out.shape == (SEQ, BATCH, D_MODEL)
    assert bool(jnp.all(jnp.isfinite(out)))
    assert bool(jnp.allclose(out, ref, atol=5e-2, rtol=5e-2)), (
        float(jnp.max(jnp.abs(out - ref))))
    print("KERNEL_OK")
</pallas_src>

<mosaic_0001>
module attributes {stable_mosaic.version = 11 : i64} {
  func.func @kernel(%arg0: memref<8x2x32xf32, #tpu.memory_space<vmem>>, %arg1: memref<8x2x32xf32, #tpu.memory_space<vmem>>, %arg2: memref<32x256xbf16, #tpu.memory_space<vmem>>, %arg3: memref<128x32xbf16, #tpu.memory_space<vmem>>, %arg4: memref<8x128xf32, #tpu.memory_space<vmem>>, %arg5: memref<8x2x32xf32, #tpu.memory_space<vmem>>, %arg6: memref<16x32xf32, #tpu.memory_space<vmem>>) attributes {dimension_semantics = [], scalar_prefetch = 0 : i64, scratch_operands = 1 : i64, tpu.core_type = #tpu.core_type<tc>} {
    %c0 = arith.constant 0 : index
    %c0_0 = arith.constant 0 : index
    %0 = vector.load %arg4[%c0, %c0_0] : memref<8x128xf32, #tpu.memory_space<vmem>>, vector<8x128xf32>
    %1 = vector.extract_strided_slice %0 {offsets = [0, 0], sizes = [1, 32], strides = [1, 1]} : vector<8x128xf32> to vector<1x32xf32>
    %2 = vector.extract_strided_slice %0 {offsets = [1, 0], sizes = [1, 32], strides = [1, 1]} : vector<8x128xf32> to vector<1x32xf32>
    %3 = vector.extract_strided_slice %0 {offsets = [2, 0], sizes = [1, 32], strides = [1, 1]} : vector<8x128xf32> to vector<1x32xf32>
    %4 = vector.extract_strided_slice %0 {offsets = [3, 0], sizes = [1, 32], strides = [1, 1]} : vector<8x128xf32> to vector<1x32xf32>
    %5 = vector.extract_strided_slice %0 {offsets = [4, 0], sizes = [1, 32], strides = [1, 1]} : vector<8x128xf32> to vector<1x32xf32>
    %6 = vector.extract_strided_slice %0 {offsets = [5, 0], sizes = [1, 32], strides = [1, 1]} : vector<8x128xf32> to vector<1x32xf32>
    %7 = vector.extract_strided_slice %0 {offsets = [6, 0], sizes = [1, 96], strides = [1, 1]} : vector<8x128xf32> to vector<1x96xf32>
    %8 = vector.extract_strided_slice %0 {offsets = [7, 0], sizes = [1, 128], strides = [1, 1]} : vector<8x128xf32> to vector<1x128xf32>
    %c0_1 = arith.constant 0 : index
    %c0_2 = arith.constant 0 : index
    %c0_3 = arith.constant 0 : index
    %9 = vector.load %arg0[%c0_1, %c0_2, %c0_3] : memref<8x2x32xf32, #tpu.memory_space<vmem>>, vector<8x1x32xf32>
    %10 = vector.shape_cast %9 : vector<8x1x32xf32> to vector<8x32xf32>
    %c0_4 = arith.constant 0 : index
    %c1 = arith.constant 1 : index
    %c0_5 = arith.constant 0 : index
    %11 = vector.load %arg0[%c0_4, %c1, %c0_5] : memref<8x2x32xf32, #tpu.memory_space<vmem>>, vector<8x1x32xf32>
    %12 = vector.shape_cast %11 : vector<8x1x32xf32> to vector<8x32xf32>
    %13 = tpu.concatenate %10, %12 in 0 : vector<8x32xf32>, vector<8x32xf32> -> vector<16x32xf32>
    %c0_6 = arith.constant 0 : index
    %c0_7 = arith.constant 0 : index
    %c0_8 = arith.constant 0 : index
    %14 = vector.load %arg1[%c0_6, %c0_7, %c0_8] : memref<8x2x32xf32, #tpu.memory_space<vmem>>, vector<8x1x32xf32>
    %15 = vector.shape_cast %14 : vector<8x1x32xf32> to vector<8x32xf32>
    %c0_9 = arith.constant 0 : index
    %c1_10 = arith.constant 1 : index
    %c0_11 = arith.constant 0 : index
    %16 = vector.load %arg1[%c0_9, %c1_10, %c0_11] : memref<8x2x32xf32, #tpu.memory_space<vmem>>, vector<8x1x32xf32>
    %17 = vector.shape_cast %16 : vector<8x1x32xf32> to vector<8x32xf32>
    %18 = tpu.concatenate %15, %17 in 0 : vector<8x32xf32>, vector<8x32xf32> -> vector<16x32xf32>
    %19 = tpu.concatenate %13, %18 in 0 : vector<16x32xf32>, vector<16x32xf32> -> vector<32x32xf32>
    %cst = arith.constant dense<0.000000e+00> : vector<32xf32>
    %20 = vector.multi_reduction <add>, %19, %cst [1] : vector<32x32xf32> to vector<32xf32>
    %21 = vector.shape_cast %20 : vector<32xf32> to vector<32x1xf32>
    %cst_12 = arith.constant 3.200000e+01 : f32
    %22 = vector.broadcast %cst_12 : f32 to vector<32x1xf32>
    %23 = arith.divf %21, %22 : vector<32x1xf32>
    %24 = vector.broadcast %23 : vector<32x1xf32> to vector<32x32xf32>
    %25 = arith.subf %19, %24 : vector<32x32xf32>
    %26 = arith.mulf %25, %25 : vector<32x32xf32>
    %cst_13 = arith.constant dense<0.000000e+00> : vector<32xf32>
    %27 = vector.multi_reduction <add>, %26, %cst_13 [1] : vector<32x32xf32> to vector<32xf32>
    %28 = vector.shape_cast %27 : vector<32xf32> to vector<32x1xf32>
    %cst_14 = arith.constant 3.200000e+01 : f32
    %29 = vector.broadcast %cst_14 : f32 to vector<32x1xf32>
    %30 = arith.divf %28, %29 : vector<32x1xf32>
    %cst_15 = arith.constant 9.99999974E-6 : f32
    %31 = vector.broadcast %cst_15 : f32 to vector<32x1xf32>
    %32 = arith.addf %30, %31 : vector<32x1xf32>
    %33 = math.rsqrt %32 : vector<32x1xf32>
    %34 = vector.broadcast %33 : vector<32x1xf32> to vector<32x32xf32>
    %35 = arith.mulf %25, %34 : vector<32x32xf32>
    %36 = vector.broadcast %1 : vector<1x32xf32> to vector<32x32xf32>
    %37 = arith.mulf %35, %36 : vector<32x32xf32>
    %38 = vector.broadcast %2 : vector<1x32xf32> to vector<32x32xf32>
    %39 = arith.addf %37, %38 : vector<32x32xf32>
    %c0_16 = arith.constant 0 : index
    %c0_17 = arith.constant 0 : index
    %40 = vector.load %arg2[%c0_16, %c0_17] : memref<32x256xbf16, #tpu.memory_space<vmem>>, vector<32x96xbf16>
    %c0_18 = arith.constant 0 : index
    %c96 = arith.constant 96 : index
    %41 = vector.load %arg2[%c0_18, %c96] : memref<32x256xbf16, #tpu.memory_space<vmem>>, vector<32x32xbf16>
    %c0_19 = arith.constant 0 : index
    %c128 = arith.constant 128 : index
    %42 = vector.load %arg2[%c0_19, %c128] : memref<32x256xbf16, #tpu.memory_space<vmem>>, vector<32x128xbf16>
    %43 = arith.truncf %39 : vector<32x32xf32> to vector<32x32xbf16>
    %cst_20 = arith.constant dense<0.000000e+00> : vector<32x96xf32>
    %44 = tpu.matmul %43, %40, %cst_20 {dimension_numbers = #tpu.dot_dimension_numbers<[1], [0], [0], [1], [0, 0, 1, 1], [], []>} : vector<32x32xbf16>, vector<32x96xbf16>, vector<32x96xf32> -> vector<32x96xf32>
    %45 = vector.broadcast %7 : vector<1x96xf32> to vector<32x96xf32>
    %46 = arith.addf %44, %45 : vector<32x96xf32>
    %47 = vector.extract_strided_slice %46 {offsets = [0, 0], sizes = [16, 32], strides = [1, 1]} : vector<32x96xf32> to vector<16x32xf32>
    %48 = arith.truncf %47 : vector<16x32xf32> to vector<16x32xbf16>
    %49 = vector.extract_strided_slice %46 {offsets = [16, 32], sizes = [16, 32], strides = [1, 1]} : vector<32x96xf32> to vector<16x32xf32>
    %50 = vector.extract_strided_slice %46 {offsets = [16, 64], sizes = [16, 32], strides = [1, 1]} : vector<32x96xf32> to vector<16x32xf32>
    %51 = arith.truncf %50 : vector<16x32xf32> to vector<16x32xbf16>
    %52 = vector.extract_strided_slice %49 {offsets = [0, 0], sizes = [8, 32], strides = [1, 1]} : vector<16x32xf32> to vector<8x32xf32>
    %53 = tpu.transpose %52, [1, 0] : vector<8x32xf32> -> vector<32x8xf32>
    %54 = arith.truncf %53 : vector<32x8xf32> to vector<32x8xbf16>
    %55 = vector.extract_strided_slice %51 {offsets = [0, 0], sizes = [8, 32], strides = [1, 1]} : vector<16x32xbf16> to vector<8x32xbf16>
    %56 = vector.extract_strided_slice %48 {offsets = [0, 0], sizes = [8, 8], strides = [1, 1]} : vector<16x32xbf16> to vector<8x8xbf16>
    %57 = vector.extract_strided_slice %54 {offsets = [0, 0], sizes = [8, 8], strides = [1, 1]} : vector<32x8xbf16> to vector<8x8xbf16>
    %cst_21 = arith.constant dense<0.000000e+00> : vector<8x8xf32>
    %58 = tpu.matmul %56, %57, %cst_21 {dimension_numbers = #tpu.dot_dimension_numbers<[1], [0], [0], [1], [0, 0, 1, 1], [], []>} : vector<8x8xbf16>, vector<8x8xbf16>, vector<8x8xf32> -> vector<8x8xf32>
    %cst_22 = arith.constant dense<0xFF800000> : vector<8xf32>
    %59 = vector.multi_reduction <maximumf>, %58, %cst_22 [1] : vector<8x8xf32> to vector<8xf32>
    %60 = vector.shape_cast %59 : vector<8xf32> to vector<8x1xf32>
    %61 = vector.broadcast %60 : vector<8x1xf32> to vector<8x8xf32>
    %62 = arith.subf %58, %61 : vector<8x8xf32>
    %63 = math.exp %62 : vector<8x8xf32>
    %cst_23 = arith.constant dense<0.000000e+00> : vector<8xf32>
    %64 = vector.multi_reduction <add>, %63, %cst_23 [1] : vector<8x8xf32> to vector<8xf32>
    %65 = vector.shape_cast %64 : vector<8xf32> to vector<8x1xf32>
    %66 = tpu.reciprocal %65 {approx = true} : vector<8x1xf32> -> vector<8x1xf32>
    %67 = vector.broadcast %66 : vector<8x1xf32> to vector<8x8xf32>
    %68 = arith.mulf %63, %67 : vector<8x8xf32>
    %69 = arith.truncf %68 : vector<8x8xf32> to vector<8x8xbf16>
    %70 = vector.extract_strided_slice %55 {offsets = [0, 0], sizes = [8, 8], strides = [1, 1]} : vector<8x32xbf16> to vector<8x8xbf16>
    %cst_24 = arith.constant dense<0.000000e+00> : vector<8x8xf32>
    %71 = tpu.matmul %69, %70, %cst_24 {dimension_numbers = #tpu.dot_dimension_numbers<[1], [0], [0], [1], [0, 0, 1, 1], [], []>} : vector<8x8xbf16>, vector<8x8xbf16>, vector<8x8xf32> -> vector<8x8xf32>
    %c0_25 = arith.constant 0 : index
    %c0_26 = arith.constant 0 : index
    %72 = vector.load %arg6[%c0_25, %c0_26] : memref<16x32xf32, #tpu.memory_space<vmem>>, vector<8x8xf32>
    tpu.vector_store %arg6[%c0_25, %c0_26], %71 {strides = array<i32>} : memref<16x32xf32, #tpu.memory_space<vmem>>, vector<8x8xf32>,
    %73 = vector.extract_strided_slice %48 {offsets = [0, 8], sizes = [8, 8], strides = [1, 1]} : vector<16x32xbf16> to vector<8x8xbf16>
    %74 = vector.extract_strided_slice %54 {offsets = [8, 0], sizes = [8, 8], strides = [1, 1]} : vector<32x8xbf16> to vector<8x8xbf16>
    %cst_27 = arith.constant dense<0.000000e+00> : vector<8x8xf32>
    %75 = tpu.matmul %73, %74, %cst_27 {dimension_numbers = #tpu.dot_dimension_numbers<[1], [0], [0], [1], [0, 0, 1, 1], [], []>} : vector<8x8xbf16>, vector<8x8xbf16>, vector<8x8xf32> -> vector<8x8xf32>
    %cst_28 = arith.constant dense<0xFF800000> : vector<8xf32>
    %76 = vector.multi_reduction <maximumf>, %75, %cst_28 [1] : vector<8x8xf32> to vector<8xf32>
    %77 = vector.shape_cast %76 : vector<8xf32> to vector<8x1xf32>
    %78 = vector.broadcast %77 : vector<8x1xf32> to vector<8x8xf32>
    %79 = arith.subf %75, %78 : vector<8x8xf32>
    %80 = math.exp %79 : vector<8x8xf32>
    %cst_29 = arith.constant dense<0.000000e+00> : vector<8xf32>
    %81 = vector.multi_reduction <add>, %80, %cst_29 [1] : vector<8x8xf32> to vector<8xf32>
    %82 = vector.shape_cast %81 : vector<8xf32> to vector<8x1xf32>
    %83 = tpu.reciprocal %82 {approx = true} : vector<8x1xf32> -> vector<8x1xf32>
    %84 = vector.broadcast %83 : vector<8x1xf32> to vector<8x8xf32>
    %85 = arith.mulf %80, %84 : vector<8x8xf32>
    %86 = arith.truncf %85 : vector<8x8xf32> to vector<8x8xbf16>
    %87 = vector.extract_strided_slice %55 {offsets = [0, 8], sizes = [8, 8], strides = [1, 1]} : vector<8x32xbf16> to vector<8x8xbf16>
    %cst_30 = arith.constant dense<0.000000e+00> : vector<8x8xf32>
    %88 = tpu.matmul %86, %87, %cst_30 {dimension_numbers = #tpu.dot_dimension_numbers<[1], [0], [0], [1], [0, 0, 1, 1], [], []>} : vector<8x8xbf16>, vector<8x8xbf16>, vector<8x8xf32> -> vector<8x8xf32>
    %c0_31 = arith.constant 0 : index
    %c8 = arith.constant 8 : index
    %89 = vector.load %arg6[%c0_31, %c8] : memref<16x32xf32, #tpu.memory_space<vmem>>, vector<8x8xf32>
    tpu.vector_store %arg6[%c0_31, %c8], %88 {strides = array<i32>} : memref<16x32xf32, #tpu.memory_space<vmem>>, vector<8x8xf32>,
    %90 = vector.extract_strided_slice %48 {offsets = [0, 16], sizes = [8, 8], strides = [1, 1]} : vector<16x32xbf16> to vector<8x8xbf16>
    %91 = vector.extract_strided_slice %54 {offsets = [16, 0], sizes = [8, 8], strides = [1, 1]} : vector<32x8xbf16> to vector<8x8xbf16>
    %cst_32 = arith.constant dense<0.000000e+00> : vector<8x8xf32>
    %92 = tpu.matmul %90, %91, %cst_32 {dimension_numbers = #tpu.dot_dimension_numbers<[1], [0], [0], [1], [0, 0, 1, 1], [], []>} : vector<8x8xbf16>, vector<8x8xbf16>, vector<8x8xf32> -> vector<8x8xf32>
    %cst_33 = arith.constant dense<0xFF800000> : vector<8xf32>
    %93 = vector.multi_reduction <maximumf>, %92, %cst_33 [1] : vector<8x8xf32> to vector<8xf32>
    %94 = vector.shape_cast %93 : vector<8xf32> to vector<8x1xf32>
    %95 = vector.broadcast %94 : vector<8x1xf32> to vector<8x8xf32>
    %96 = arith.subf %92, %95 : vector<8x8xf32>
    %97 = math.exp %96 : vector<8x8xf32>
    %cst_34 = arith.constant dense<0.000000e+00> : vector<8xf32>
    %98 = vector.multi_reduction <add>, %97, %cst_34 [1] : vector<8x8xf32> to vector<8xf32>
    %99 = vector.shape_cast %98 : vector<8xf32> to vector<8x1xf32>
    %100 = tpu.reciprocal %99 {approx = true} : vector<8x1xf32> -> vector<8x1xf32>
    %101 = vector.broadcast %100 : vector<8x1xf32> to vector<8x8xf32>
    %102 = arith.mulf %97, %101 : vector<8x8xf32>
    %103 = arith.truncf %102 : vector<8x8xf32> to vector<8x8xbf16>
    %104 = vector.extract_strided_slice %55 {offsets = [0, 16], sizes = [8, 8], strides = [1, 1]} : vector<8x32xbf16> to vector<8x8xbf16>
    %cst_35 = arith.constant dense<0.000000e+00> : vector<8x8xf32>
    %105 = tpu.matmul %103, %104, %cst_35 {dimension_numbers = #tpu.dot_dimension_numbers<[1], [0], [0], [1], [0, 0, 1, 1], [], []>} : vector<8x8xbf16>, vector<8x8xbf16>, vector<8x8xf32> -> vector<8x8xf32>
    %c0_36 = arith.constant 0 : index
    %c16 = arith.constant 16 : index
    %106 = vector.load %arg6[%c0_36, %c16] : memref<16x32xf32, #tpu.memory_space<vmem>>, vector<8x8xf32>
    tpu.vector_store %arg6[%c0_36, %c16], %105 {strides = array<i32>} : memref<16x32xf32, #tpu.memory_space<vmem>>, vector<8x8xf32>,
    %107 = vector.extract_strided_slice %48 {offsets = [0, 24], sizes = [8, 8], strides = [1, 1]} : vector<16x32xbf16> to vector<8x8xbf16>
    %108 = vector.extract_strided_slice %54 {offsets = [24, 0], sizes = [8, 8], strides = [1, 1]} : vector<32x8xbf16> to vector<8x8xbf16>
    %cst_37 = arith.constant dense<0.000000e+00> : vector<8x8xf32>
    %109 = tpu.matmul %107, %108, %cst_37 {dimension_numbers = #tpu.dot_dimension_numbers<[1], [0], [0], [1], [0, 0, 1, 1], [], []>} : vector<8x8xbf16>, vector<8x8xbf16>, vector<8x8xf32> -> vector<8x8xf32>
    %cst_38 = arith.constant dense<0xFF800000> : vector<8xf32>
    %110 = vector.multi_reduction <maximumf>, %109, %cst_38 [1] : vector<8x8xf32> to vector<8xf32>
    %111 = vector.shape_cast %110 : vector<8xf32> to vector<8x1xf32>
    %112 = vector.broadcast %111 : vector<8x1xf32> to vector<8x8xf32>
    %113 = arith.subf %109, %112 : vector<8x8xf32>
    %114 = math.exp %113 : vector<8x8xf32>
    %cst_39 = arith.constant dense<0.000000e+00> : vector<8xf32>
    %115 = vector.multi_reduction <add>, %114, %cst_39 [1] : vector<8x8xf32> to vector<8xf32>
    %116 = vector.shape_cast %115 : vector<8xf32> to vector<8x1xf32>
    %117 = tpu.reciprocal %116 {approx = true} : vector<8x1xf32> -> vector<8x1xf32>
    %118 = vector.broadcast %117 : vector<8x1xf32> to vector<8x8xf32>
    %119 = arith.mulf %114, %118 : vector<8x8xf32>
    %120 = arith.truncf %119 : vector<8x8xf32> to vector<8x8xbf16>
    %121 = vector.extract_strided_slice %55 {offsets = [0, 24], sizes = [8, 8], strides = [1, 1]} : vector<8x32xbf16> to vector<8x8xbf16>
    %cst_40 = arith.constant dense<0.000000e+00> : vector<8x8xf32>
    %122 = tpu.matmul %120, %121, %cst_40 {dimension_numbers = #tpu.dot_dimension_numbers<[1], [0], [0], [1], [0, 0, 1, 1], [], []>} : vector<8x8xbf16>, vector<8x8xbf16>, vector<8x8xf32> -> vector<8x8xf32>
    %c0_41 = arith.constant 0 : index
    %c24 = arith.constant 24 : index
    %123 = vector.load %arg6[%c0_41, %c24] : memref<16x32xf32, #tpu.memory_space<vmem>>, vector<8x8xf32>
    tpu.vector_store %arg6[%c0_41, %c24], %122 {strides = array<i32>} : memref<16x32xf32, #tpu.memory_space<vmem>>, vector<8x8xf32>,
    %124 = vector.extract_strided_slice %49 {offsets = [8, 0], sizes = [8, 32], strides = [1, 1]} : vector<16x32xf32> to vector<8x32xf32>
    %125 = tpu.transpose %124, [1, 0] : vector<8x32xf32> -> vector<32x8xf32>
    %126 = arith.truncf %125 : vector<32x8xf32> to vector<32x8xbf16>
    %127 = vector.extract_strided_slice %51 {offsets = [8, 0], sizes = [8, 32], strides = [1, 1]} : vector<16x32xbf16> to vector<8x32xbf16>
    %128 = vector.extract_strided_slice %48 {offsets = [8, 0], sizes = [8, 8], strides = [1, 1]} : vector<16x32xbf16> to vector<8x8xbf16>
    %129 = vector.extract_strided_slice %126 {offsets = [0, 0], sizes = [8, 8], strides = [1, 1]} : vector<32x8xbf16> to vector<8x8xbf16>
    %cst_42 = arith.constant dense<0.000000e+00> : vector<8x8xf32>
    %130 = tpu.matmul %128, %129, %cst_42 {dimension_numbers = #tpu.dot_dimension_numbers<[1], [0], [0], [1], [0, 0, 1, 1], [], []>} : vector<8x8xbf16>, vector<8x8xbf16>, vector<8x8xf32> -> vector<8x8xf32>
    %cst_43 = arith.constant dense<0xFF800000> : vector<8xf32>
    %131 = vector.multi_reduction <maximumf>, %130, %cst_43 [1] : vector<8x8xf32> to vector<8xf32>
    %132 = vector.shape_cast %131 : vector<8xf32> to vector<8x1xf32>
    %133 = vector.broadcast %132 : vector<8x1xf32> to vector<8x8xf32>
    %134 = arith.subf %130, %133 : vector<8x8xf32>
    %135 = math.exp %134 : vector<8x8xf32>
    %cst_44 = arith.constant dense<0.000000e+00> : vector<8xf32>
    %136 = vector.multi_reduction <add>, %135, %cst_44 [1] : vector<8x8xf32> to vector<8xf32>
    %137 = vector.shape_cast %136 : vector<8xf32> to vector<8x1xf32>
    %138 = tpu.reciprocal %137 {approx = true} : vector<8x1xf32> -> vector<8x1xf32>
    %139 = vector.broadcast %138 : vector<8x1xf32> to vector<8x8xf32>
    %140 = arith.mulf %135, %139 : vector<8x8xf32>
    %141 = arith.truncf %140 : vector<8x8xf32> to vector<8x8xbf16>
    %142 = vector.extract_strided_slice %127 {offsets = [0, 0], sizes = [8, 8], strides = [1, 1]} : vector<8x32xbf16> to vector<8x8xbf16>
    %cst_45 = arith.constant dense<0.000000e+00> : vector<8x8xf32>
    %143 = tpu.matmul %141, %142, %cst_45 {dimension_numbers = #tpu.dot_dimension_numbers<[1], [0], [0], [1], [0, 0, 1, 1], [], []>} : vector<8x8xbf16>, vector<8x8xbf16>, vector<8x8xf32> -> vector<8x8xf32>
    %c8_46 = arith.constant 8 : index
    %c0_47 = arith.constant 0 : index
    %144 = vector.load %arg6[%c8_46, %c0_47] : memref<16x32xf32, #tpu.memory_space<vmem>>, vector<8x8xf32>
    tpu.vector_store %arg6[%c8_46, %c0_47], %143 {strides = array<i32>} : memref<16x32xf32, #tpu.memory_space<vmem>>, vector<8x8xf32>,
    %145 = vector.extract_strided_slice %48 {offsets = [8, 8], sizes = [8, 8], strides = [1, 1]} : vector<16x32xbf16> to vector<8x8xbf16>
    %146 = vector.extract_strided_slice %126 {offsets = [8, 0], sizes = [8, 8], strides = [1, 1]} : vector<32x8xbf16> to vector<8x8xbf16>
    %cst_48 = arith.constant dense<0.000000e+00> : vector<8x8xf32>
    %147 = tpu.matmul %145, %146, %cst_48 {dimension_numbers = #tpu.dot_dimension_numbers<[1], [0], [0], [1], [0, 0, 1, 1], [], []>} : vector<8x8xbf16>, vector<8x8xbf16>, vector<8x8xf32> -> vector<8x8xf32>
    %cst_49 = arith.constant dense<0xFF800000> : vector<8xf32>
    %148 = vector.multi_reduction <maximumf>, %147, %cst_49 [1] : vector<8x8xf32> to vector<8xf32>
    %149 = vector.shape_cast %148 : vector<8xf32> to vector<8x1xf32>
    %150 = vector.broadcast %149 : vector<8x1xf32> to vector<8x8xf32>
    %151 = arith.subf %147, %150 : vector<8x8xf32>
    %152 = math.exp %151 : vector<8x8xf32>
    %cst_50 = arith.constant dense<0.000000e+00> : vector<8xf32>
    %153 = vector.multi_reduction <add>, %152, %cst_50 [1] : vector<8x8xf32> to vector<8xf32>
    %154 = vector.shape_cast %153 : vector<8xf32> to vector<8x1xf32>
    %155 = tpu.reciprocal %154 {approx = true} : vector<8x1xf32> -> vector<8x1xf32>
    %156 = vector.broadcast %155 : vector<8x1xf32> to vector<8x8xf32>
    %157 = arith.mulf %152, %156 : vector<8x8xf32>
    %158 = arith.truncf %157 : vector<8x8xf32> to vector<8x8xbf16>
    %159 = vector.extract_strided_slice %127 {offsets = [0, 8], sizes = [8, 8], strides = [1, 1]} : vector<8x32xbf16> to vector<8x8xbf16>
    %cst_51 = arith.constant dense<0.000000e+00> : vector<8x8xf32>
    %160 = tpu.matmul %158, %159, %cst_51 {dimension_numbers = #tpu.dot_dimension_numbers<[1], [0], [0], [1], [0, 0, 1, 1], [], []>} : vector<8x8xbf16>, vector<8x8xbf16>, vector<8x8xf32> -> vector<8x8xf32>
    %c8_52 = arith.constant 8 : index
    %c8_53 = arith.constant 8 : index
    %161 = vector.load %arg6[%c8_52, %c8_53] : memref<16x32xf32, #tpu.memory_space<vmem>>, vector<8x8xf32>
    tpu.vector_store %arg6[%c8_52, %c8_53], %160 {strides = array<i32>} : memref<16x32xf32, #tpu.memory_space<vmem>>, vector<8x8xf32>,
    %162 = vector.extract_strided_slice %48 {offsets = [8, 16], sizes = [8, 8], strides = [1, 1]} : vector<16x32xbf16> to vector<8x8xbf16>
    %163 = vector.extract_strided_slice %126 {offsets = [16, 0], sizes = [8, 8], strides = [1, 1]} : vector<32x8xbf16> to vector<8x8xbf16>
    %cst_54 = arith.constant dense<0.000000e+00> : vector<8x8xf32>
    %164 = tpu.matmul %162, %163, %cst_54 {dimension_numbers = #tpu.dot_dimension_numbers<[1], [0], [0], [1], [0, 0, 1, 1], [], []>} : vector<8x8xbf16>, vector<8x8xbf16>, vector<8x8xf32> -> vector<8x8xf32>
    %cst_55 = arith.constant dense<0xFF800000> : vector<8xf32>
    %165 = vector.multi_reduction <maximumf>, %164, %cst_55 [1] : vector<8x8xf32> to vector<8xf32>
    %166 = vector.shape_cast %165 : vector<8xf32> to vector<8x1xf32>
    %167 = vector.broadcast %166 : vector<8x1xf32> to vector<8x8xf32>
    %168 = arith.subf %164, %167 : vector<8x8xf32>
    %169 = math.exp %168 : vector<8x8xf32>
    %cst_56 = arith.constant dense<0.000000e+00> : vector<8xf32>
    %170 = vector.multi_reduction <add>, %169, %cst_56 [1] : vector<8x8xf32> to vector<8xf32>
    %171 = vector.shape_cast %170 : vector<8xf32> to vector<8x1xf32>
    %172 = tpu.reciprocal %171 {approx = true} : vector<8x1xf32> -> vector<8x1xf32>
    %173 = vector.broadcast %172 : vector<8x1xf32> to vector<8x8xf32>
    %174 = arith.mulf %169, %173 : vector<8x8xf32>
    %175 = arith.truncf %174 : vector<8x8xf32> to vector<8x8xbf16>
    %176 = vector.extract_strided_slice %127 {offsets = [0, 16], sizes = [8, 8], strides = [1, 1]} : vector<8x32xbf16> to vector<8x8xbf16>
    %cst_57 = arith.constant dense<0.000000e+00> : vector<8x8xf32>
    %177 = tpu.matmul %175, %176, %cst_57 {dimension_numbers = #tpu.dot_dimension_numbers<[1], [0], [0], [1], [0, 0, 1, 1], [], []>} : vector<8x8xbf16>, vector<8x8xbf16>, vector<8x8xf32> -> vector<8x8xf32>
    %c8_58 = arith.constant 8 : index
    %c16_59 = arith.constant 16 : index
    %178 = vector.load %arg6[%c8_58, %c16_59] : memref<16x32xf32, #tpu.memory_space<vmem>>, vector<8x8xf32>
    tpu.vector_store %arg6[%c8_58, %c16_59], %177 {strides = array<i32>} : memref<16x32xf32, #tpu.memory_space<vmem>>, vector<8x8xf32>,
    %179 = vector.extract_strided_slice %48 {offsets = [8, 24], sizes = [8, 8], strides = [1, 1]} : vector<16x32xbf16> to vector<8x8xbf16>
    %180 = vector.extract_strided_slice %126 {offsets = [24, 0], sizes = [8, 8], strides = [1, 1]} : vector<32x8xbf16> to vector<8x8xbf16>
    %cst_60 = arith.constant dense<0.000000e+00> : vector<8x8xf32>
    %181 = tpu.matmul %179, %180, %cst_60 {dimension_numbers = #tpu.dot_dimension_numbers<[1], [0], [0], [1], [0, 0, 1, 1], [], []>} : vector<8x8xbf16>, vector<8x8xbf16>, vector<8x8xf32> -> vector<8x8xf32>
    %cst_61 = arith.constant dense<0xFF800000> : vector<8xf32>
    %182 = vector.multi_reduction <maximumf>, %181, %cst_61 [1] : vector<8x8xf32> to vector<8xf32>
    %183 = vector.shape_cast %182 : vector<8xf32> to vector<8x1xf32>
    %184 = vector.broadcast %183 : vector<8x1xf32> to vector<8x8xf32>
    %185 = arith.subf %181, %184 : vector<8x8xf32>
    %186 = math.exp %185 : vector<8x8xf32>
    %cst_62 = arith.constant dense<0.000000e+00> : vector<8xf32>
    %187 = vector.multi_reduction <add>, %186, %cst_62 [1] : vector<8x8xf32> to vector<8xf32>
    %188 = vector.shape_cast %187 : vector<8xf32> to vector<8x1xf32>
    %189 = tpu.reciprocal %188 {approx = true} : vector<8x1xf32> -> vector<8x1xf32>
    %190 = vector.broadcast %189 : vector<8x1xf32> to vector<8x8xf32>
    %191 = arith.mulf %186, %190 : vector<8x8xf32>
    %192 = arith.truncf %191 : vector<8x8xf32> to vector<8x8xbf16>
    %193 = vector.extract_strided_slice %127 {offsets = [0, 24], sizes = [8, 8], strides = [1, 1]} : vector<8x32xbf16> to vector<8x8xbf16>
    %cst_63 = arith.constant dense<0.000000e+00> : vector<8x8xf32>
    %194 = tpu.matmul %192, %193, %cst_63 {dimension_numbers = #tpu.dot_dimension_numbers<[1], [0], [0], [1], [0, 0, 1, 1], [], []>} : vector<8x8xbf16>, vector<8x8xbf16>, vector<8x8xf32> -> vector<8x8xf32>
    %c8_64 = arith.constant 8 : index
    %c24_65 = arith.constant 24 : index
    %195 = vector.load %arg6[%c8_64, %c24_65] : memref<16x32xf32, #tpu.memory_space<vmem>>, vector<8x8xf32>
    tpu.vector_store %arg6[%c8_64, %c24_65], %194 {strides = array<i32>} : memref<16x32xf32, #tpu.memory_space<vmem>>, vector<8x8xf32>,
    %c0_66 = arith.constant 0 : index
    %c0_67 = arith.constant 0 : index
    %196 = vector.load %arg6[%c0_66, %c0_67] : memref<16x32xf32, #tpu.memory_space<vmem>>, vector<16x32xf32>
    %197 = arith.truncf %196 : vector<16x32xf32> to vector<16x32xbf16>
    %cst_68 = arith.constant dense<0.000000e+00> : vector<16x32xf32>
    %198 = tpu.matmul %197, %41, %cst_68 {dimension_numbers = #tpu.dot_dimension_numbers<[1], [0], [0], [1], [0, 0, 1, 1], [], []>} : vector<16x32xbf16>, vector<32x32xbf16>, vector<16x32xf32> -> vector<16x32xf32>
    %199 = arith.addf %13, %198 : vector<16x32xf32>
    %200 = vector.broadcast %5 : vector<1x32xf32> to vector<16x32xf32>
    %201 = arith.addf %199, %200 : vector<16x32xf32>
    %cst_69 = arith.constant dense<0.000000e+00> : vector<16xf32>
    %202 = vector.multi_reduction <add>, %201, %cst_69 [1] : vector<16x32xf32> to vector<16xf32>
    %203 = vector.shape_cast %202 : vector<16xf32> to vector<16x1xf32>
    %cst_70 = arith.constant 3.200000e+01 : f32
    %204 = vector.broadcast %cst_70 : f32 to vector<16x1xf32>
    %205 = arith.divf %203, %204 : vector<16x1xf32>
    %206 = vector.broadcast %205 : vector<16x1xf32> to vector<16x32xf32>
    %207 = arith.subf %201, %206 : vector<16x32xf32>
    %208 = arith.mulf %207, %207 : vector<16x32xf32>
    %cst_71 = arith.constant dense<0.000000e+00> : vector<16xf32>
    %209 = vector.multi_reduction <add>, %208, %cst_71 [1] : vector<16x32xf32> to vector<16xf32>
    %210 = vector.shape_cast %209 : vector<16xf32> to vector<16x1xf32>
    %cst_72 = arith.constant 3.200000e+01 : f32
    %211 = vector.broadcast %cst_72 : f32 to vector<16x1xf32>
    %212 = arith.divf %210, %211 : vector<16x1xf32>
    %cst_73 = arith.constant 9.99999974E-6 : f32
    %213 = vector.broadcast %cst_73 : f32 to vector<16x1xf32>
    %214 = arith.addf %212, %213 : vector<16x1xf32>
    %215 = math.rsqrt %214 : vector<16x1xf32>
    %216 = vector.broadcast %215 : vector<16x1xf32> to vector<16x32xf32>
    %217 = arith.mulf %207, %216 : vector<16x32xf32>
    %218 = vector.broadcast %3 : vector<1x32xf32> to vector<16x32xf32>
    %219 = arith.mulf %217, %218 : vector<16x32xf32>
    %220 = vector.broadcast %4 : vector<1x32xf32> to vector<16x32xf32>
    %221 = arith.addf %219, %220 : vector<16x32xf32>
    %222 = arith.truncf %221 : vector<16x32xf32> to vector<16x32xbf16>
    %cst_74 = arith.constant dense<0.000000e+00> : vector<16x128xf32>
    %223 = tpu.matmul %222, %42, %cst_74 {dimension_numbers = #tpu.dot_dimension_numbers<[1], [0], [0], [1], [0, 0, 1, 1], [], []>} : vector<16x32xbf16>, vector<32x128xbf16>, vector<16x128xf32> -> vector<16x128xf32>
    %224 = vector.broadcast %8 : vector<1x128xf32> to vector<16x128xf32>
    %225 = arith.addf %223, %224 : vector<16x128xf32>
    %cst_75 = arith.constant 0.000000e+00 : f32
    %226 = vector.broadcast %cst_75 : f32 to vector<16x128xf32>
    %227 = arith.maximumf %225, %226 : vector<16x128xf32>
    %228 = arith.truncf %227 : vector<16x128xf32> to vector<16x128xbf16>
    %c0_76 = arith.constant 0 : index
    %c0_77 = arith.constant 0 : index
    %229 = vector.load %arg3[%c0_76, %c0_77] : memref<128x32xbf16, #tpu.memory_space<vmem>>, vector<128x32xbf16>
    %cst_78 = arith.constant dense<0.000000e+00> : vector<16x32xf32>
    %230 = tpu.matmul %228, %229, %cst_78 {dimension_numbers = #tpu.dot_dimension_numbers<[1], [0], [0], [1], [0, 0, 1, 1], [], []>} : vector<16x128xbf16>, vector<128x32xbf16>, vector<16x32xf32> -> vector<16x32xf32>
    %231 = vector.broadcast %6 : vector<1x32xf32> to vector<16x32xf32>
    %232 = arith.addf %230, %231 : vector<16x32xf32>
    %233 = arith.addf %201, %232 : vector<16x32xf32>
    %234 = vector.extract_strided_slice %233 {offsets = [0, 0], sizes = [8, 32], strides = [1, 1]} : vector<16x32xf32> to vector<8x32xf32>
    %c0_79 = arith.constant 0 : index
    %c0_80 = arith.constant 0 : index
    %c0_81 = arith.constant 0 : index
    %235 = vector.load %arg5[%c0_79, %c0_80, %c0_81] : memref<8x2x32xf32, #tpu.memory_space<vmem>>, vector<8x1x32xf32>
    %236 = vector.shape_cast %235 : vector<8x1x32xf32> to vector<8x32xf32>
    %237 = vector.shape_cast %234 : vector<8x32xf32> to vector<8x1x32xf32>
    tpu.vector_store %arg5[%c0_79, %c0_80, %c0_81], %237 {strides = array<i32>} : memref<8x2x32xf32, #tpu.memory_space<vmem>>, vector<8x1x32xf32>,
    %238 = vector.extract_strided_slice %233 {offsets = [8, 0], sizes = [8, 32], strides = [1, 1]} : vector<16x32xf32> to vector<8x32xf32>
    %c0_82 = arith.constant 0 : index
    %c1_83 = arith.constant 1 : index
    %c0_84 = arith.constant 0 : index
    %239 = vector.load %arg5[%c0_82, %c1_83, %c0_84] : memref<8x2x32xf32, #tpu.memory_space<vmem>>, vector<8x1x32xf32>
    %240 = vector.shape_cast %239 : vector<8x1x32xf32> to vector<8x32xf32>
    %241 = vector.shape_cast %238 : vector<8x32xf32> to vector<8x1x32xf32>
    tpu.vector_store %arg5[%c0_82, %c1_83, %c0_84], %241 {strides = array<i32>} : memref<8x2x32xf32, #tpu.memory_space<vmem>>, vector<8x1x32xf32>,
    return
  }
}

</mosaic_0001>

<bundles_post_ra>
// kernel: cross_att_forward.1
= control target key start
LH: loop header
LB: loop body
LE: loop exit
PB: predicated region body
PF: predicated region fallthrough
CT: control target
= control target key end

     0   :  { %vm48_vm0 = vcmask 1041409   ;;  %vm51_vm1 = vcmask 1042434   ;;  %vm54_vm2 = vcmask 1043459   ;;  %vm57_vm3 = vcmask 1044484   ;;  %s2534_s0 = inlined_call_operand.vmem [shape: f32[8,2,32], index: 0, kind: input, shape index: {}]   ;;  %s2535_s1 = inlined_call_operand.vmem [shape: f32[8,2,32], index: 1, kind: input, shape index: {}]   ;;  %s2536_s2 = inlined_call_operand.vmem [shape: bf16[32,256], index: 2, kind: input, shape index: {}]   ;;  %s2537_s3 = inlined_call_operand.vmem [shape: bf16[128,32], index: 3, kind: input, shape index: {}]   ;;  %s2538_s4 = inlined_call_operand.vmem [shape: f32[8,128], index: 4, kind: input, shape index: {}]   ;;  %s2539_s5 = inlined_call_operand.hbm [shape: f32[8,2,32], index: 5, kind: output, shape index: {}]  }
   0x1   :  { %v23_v0 = vld [vmem:[%s2534_s0] sm:$0x1]  ;;  %v24_v1 = vld [vmem:[%s2534_s0 + $0x2] sm:$0x1]  ;;  %v25_v2 = vld [vmem:[%s2534_s0 + $0x4] sm:$0x1] }
   0x2   :  { %v26_v3 = vld [vmem:[%s2534_s0 + $0x6] sm:$0x1]  ;;  %v27_v4 = vld [vmem:[%s2534_s0 + $0x8] sm:$0x1]  ;;  %v28_v5 = vld [vmem:[%s2534_s0 + $0xa] sm:$0x1] }
   0x3   :  { %v29_v6 = vld [vmem:[%s2534_s0 + $0xc] sm:$0x1]  ;;  %v47_v7 = vrot.slane %v24_v1, 7  ;;  %v30_v8 = vld [vmem:[%s2534_s0 + $0xe] sm:$0x1]  ;;  %v50_v9 = vrot.slane %v25_v2, 6 }
   0x4   :  { %v53_v10 = vrot.slane %v26_v3, 5  ;;  %v56_v12 = vrot.slane %v27_v4, 4  ;;  %v59_v13 = vrot.slane %v28_v5, 3  ;;  %v93_v14 = vld [vmem:[%s2535_s1 + $0x2] sm:$0x1]  ;;  %vm60_vm4 = vcmask 1045509  }
   0x5   :  { %v49_v11 = vsel %vm48_vm0, %v47_v7, %v23_v0  ;;  %v62_v16 = vrot.slane %v29_v6, 2  ;;  %vm63_vm5 = vcmask 1046534   ;;  %v92_v17 = vld [vmem:[%s2535_s1] sm:$0x1]  ;;  %v94_v18 = vld [vmem:[%s2535_s1 + $0x4] sm:$0x1] }
   0x6   :  { %v52_v15 = vsel %vm51_vm1, %v50_v9, %v49_v11  ;;  %v65_v20 = vrot.slane %v30_v8, 1  ;;  %vm66_vm6 = vcmask 1047559   ;;  %vm154_vm7 = vcmask 261120   ;;  %v95_v21 = vld [vmem:[%s2535_s1 + $0x6] sm:$0x1] }
   0x7   :  { %v55_v19 = vsel %vm54_vm2, %v53_v10, %v52_v15  ;;  %v96_v23 = vld [vmem:[%s2535_s1 + $0x8] sm:$0x1]  ;;  %v97_v24 = vld [vmem:[%s2535_s1 + $0xa] sm:$0x1]  ;;  %v98_v25 = vld [vmem:[%s2535_s1 + $0xc] sm:$0x1] }
   0x8   :  { %v58_v22 = vsel %vm57_vm3, %v56_v12, %v55_v19  ;;  %v99_v27 = vld [vmem:[%s2535_s1 + $0xe] sm:$0x1]  ;;  %v116_v28 = vrot.slane %v93_v14, 7  ;;  %v118_v29 = vrot.slane %v94_v18, 6  ;;  %v120_v30 = vrot.slane %v95_v21, 5 }
   0x9   :  { %v61_v26 = vsel %vm60_vm4, %v59_v13, %v58_v22  ;;  %v122_v32 = vrot.slane %v96_v23, 4  ;;  %v124_v33 = vrot.slane %v97_v24, 3  ;;  %v31_v34 = vld [vmem:[%s2534_s0 + $0x1] sm:$0x1]  ;;  %v126_v37 = vrot.slane %v98_v25, 2 }
   0xa   :  { %v64_v31 = vsel %vm63_vm5, %v62_v16, %v61_v26  ;;  %v117_v36 = vsel %vm48_vm0, %v116_v28, %v92_v17  ;;  %v128_v38 = vrot.slane %v99_v27, 1  ;;  %v32_v39 = vld [vmem:[%s2534_s0 + $0x3] sm:$0x1]  ;;  %v33_v40 = vld [vmem:[%s2534_s0 + $0x5] sm:$0x1] }
   0xb   :  { %v2167_v35 = vsel %vm66_vm6, %v65_v20, %v64_v31  ;;  %v119_v42 = vsel %vm51_vm1, %v118_v29, %v117_v36  ;;  %v34_v43 = vld [vmem:[%s2534_s0 + $0x7] sm:$0x1]  ;;  %v35_v44 = vld [vmem:[%s2534_s0 + $0x9] sm:$0x1]  ;;  %v77_v45 = vrot.slane %v32_v39, 7  ;;  %v79_v52 = vrot.slane %v33_v40, 6 }
   0xc   :  { %v155_v41 = vsel %vm154_vm7, %v2167_v35, 0.0  ;;  %v121_v46 = vsel %vm54_vm2, %v120_v30, %v119_v42  ;;  %v36_v47 = vld [vmem:[%s2534_s0 + $0xb] sm:$0x1]  ;;  %v37_v48 = vld [vmem:[%s2534_s0 + $0xd] sm:$0x1]  ;;  %v81_v53 = vrot.slane %v34_v43, 5 }
   0xd   :  { %156 = vadd.xlane.f32.xlu0 %v155_v41  ;;  %v38_v49 = vld [vmem:[%s2534_s0 + $0xf] sm:$0x1]  ;;  %v123_v50 = vsel %vm57_vm3, %v122_v32, %v121_v46  ;;  %v78_v51 = vsel %vm48_vm0, %v77_v45, %v31_v34  ;;  %v100_v54 = vld [vmem:[%s2535_s1 + $0x1] sm:$0x1]  ;;  %v101_v55 = vld [vmem:[%s2535_s1 + $0x3] sm:$0x1] }
   0xe   :  { %v125_v56 = vsel %vm60_vm4, %v124_v33, %v123_v50  ;;  %v83_v57 = vrot.slane %v35_v44, 4  ;;  %v85_v58 = vrot.slane %v36_v47, 3  ;;  %v87_v59 = vrot.slane %v37_v48, 2  ;;  %v102_v60 = vld [vmem:[%s2535_s1 + $0x5] sm:$0x1] }
   0xf   :  { %v127_v61 = vsel %vm63_vm5, %v126_v37, %v125_v56  ;;  %v80_v62 = vsel %vm51_vm1, %v79_v52, %v78_v51  ;;  %v89_v63 = vrot.slane %v38_v49, 1  ;;  %v103_v0 = vld [vmem:[%s2535_s1 + $0x7] sm:$0x1]  ;;  %v104_v1 = vld [vmem:[%s2535_s1 + $0x9] sm:$0x1]  ;;  %v139_v2 = vrot.slane %v101_v55, 7 }
  0x10   :  { %v129_v3 = vsel %vm66_vm6, %v128_v38, %v127_v61  ;;  %v82_v4 = vsel %vm54_vm2, %v81_v53, %v80_v62  ;;  %v105_v5 = vld [vmem:[%s2535_s1 + $0xb] sm:$0x1]  ;;  %v106_v6 = vld [vmem:[%s2535_s1 + $0xd] sm:$0x1]  ;;  %v107_v7 = vld [vmem:[%s2535_s1 + $0xf] sm:$0x1] }
  0x11   :  { %v161_v8 = vsel %vm154_vm7, %v129_v3, 0.0  ;;  %v84_v9 = vsel %vm57_vm3, %v83_v57, %v82_v4  ;;  %v140_v10 = vsel %vm48_vm0, %v139_v2, %v100_v54  ;;  %v141_v11 = vrot.slane %v102_v60, 6 }
  0x12   :  { %162 = vadd.xlane.f32.xlu1 %v161_v8  ;;  %v86_v12 = vsel %vm60_vm4, %v85_v58, %v84_v9  ;;  %v143_v13 = vrot.slane %v103_v0, 5  ;;  %v145_v14 = vrot.slane %v104_v1, 4  ;;  %v147_v15 = vrot.slane %v105_v5, 3 }
  0x13   :  { %v88_v16 = vsel %vm63_vm5, %v87_v59, %v86_v12  ;;  %v142_v17 = vsel %vm51_vm1, %v141_v11, %v140_v10  ;;  %v149_v18 = vrot.slane %v106_v6, 2  ;;  %v151_v19 = vrot.slane %v107_v7, 1 }
  0x14   :  { %v2233_v20 = vsel %vm66_vm6, %v89_v63, %v88_v16  ;;  %v144_v21 = vsel %vm54_vm2, %v143_v13, %v142_v17 }
  0x15   :  { %v158_v22 = vsel %vm154_vm7, %v2233_v20, 0.0  ;;  %v146_v23 = vsel %vm57_vm3, %v145_v14, %v144_v21 }
  0x16   :  { %159 = vadd.xlane.f32.xlu0 %v158_v22  ;;  %v148_v24 = vsel %vm60_vm4, %v147_v15, %v146_v23 }
  0x17   :  { %v150_v25 = vsel %vm63_vm5, %v149_v18, %v148_v24 }
  0x18   :  { %v152_v26 = vsel %vm66_vm6, %v151_v19, %v150_v25 }
  0x19   :  { %v164_v27 = vsel %vm154_vm7, %v152_v26, 0.0 }
  0x1a   :  { %165 = vadd.xlane.f32.xlu1 %v164_v27 }
  0x1b   :  { %10 = vsyncpa [#allocation4], 0  ;;  %v2252_v49 = vld [vmem:[%s2536_s2] ss:$8 sps:$4 sm:$0xff]   ;;  %v2258_v50 = vld [vmem:[%s2536_s2 + $0x10] ss:$8 sps:$4 sm:$0xff]   ;;  %v208_v58 = vlaneseq }
  0x1c   :  { %1798 = vmatprep.subr.bf16.mxu1 %v2252_v49  ;;  %s2063_s11 = smov 120   ;;  %s2064_s12 = smov 112   ;;  %vm2067_vm8 = vmmov 0   ;;  %vm349_vm9 = vcmask 1043456   ;;  %vm345_vm10 = vcmask 64512   ;;  %vm570_vm11 = vcmask 130112  }
  0x1d   :  { %1799 = vmatpush3.bf16.msra.mxu1 %v2252_v49  ;;  %v2263_v62 = vshrl.u32 %v208_v58, 7  ;;  %s2065_s13 = smov 104   ;;  %s2068_s14 = smov 64   ;;  %vm684_vm12 = vcmask 195712   ;;  %vm800_vm13 = vcmask 261312   ;;  %vm1624_vm14 = vcmask 253952  }
  0x1e   :  { %1800 = vmatprep.subr.bf16.mxu1 %v2258_v50  ;;  %s2069_s15 = smov 40   ;;  %s2070_s16 = smov 56  }
  0x1f   :  { %v210_v1 = vsub.s32 0, %v2263_v62  ;;  %v218_v6 = vsub.s32 1, %v2263_v62  ;;  %v236_v25 = vsub.s32 6, %v2263_v62  ;;  %s2071_s17 = smov 48   ;;  %s2072_s18 = smov 8  }
  0x20   :  { %s2073_s19 = smov 16   ;;  %s2074_s0 = smov 24  }
  0x21   :  { %1801 = vmatpush3.bf16.msra.mxu1 %v2258_v50  ;;  %s2075_s20 = smov 32  }
  0x9a   :  { %v157_v28 = vpop.xlane.xlu0 %156 }
  0x9b   :  { %v168_v29 = vmul.f32 0.03125, %v157_v28 }
  0x9d   :  { %v172_v30 = vsub.f32 %v2167_v35, %v168_v29 }
  0x9f   :  { %v176_v31 = vmul.f32 %v172_v30, %v172_v30  ;;  %v163_v32 = vpop.xlane.xlu1 %162 }
  0xa0   :  { %v170_v33 = vmul.f32 0.03125, %v163_v32 }
  0xa1   :  { %v180_v34 = vsel %vm154_vm7, %v176_v31, 0.0 }
  0xa2   :  { %181 = vadd.xlane.f32.xlu0 %v180_v34  ;;  %v174_v36 = vsub.f32 %v129_v3, %v170_v33  ;;  %v2269_v3 = vld [vmem:[%s2538_s4] sm:$0xff]  ;;  %s2062_s4 = smov 96  }
  0xa3   :  { %v160_v37 = vpop.xlane.xlu0 %159  ;;  %v211_v5 = vrot.slane %v2269_v3, %v210_v1  ;;  %v219_v12 = vrot.slane %v2269_v3, %v218_v6 }
  0xa4   :  { %v169_v38 = vmul.f32 0.03125, %v160_v37  ;;  %v178_v39 = vmul.f32 %v174_v36, %v174_v36 }
  0xa6   :  { %v173_v40 = vsub.f32 %v2233_v20, %v169_v38  ;;  %v186_v41 = vsel %vm154_vm7, %v178_v39, 0.0 }
  0xa7   :  { %v166_v42 = vpop.xlane.xlu1 %165  ;;  %187 = vadd.xlane.f32.xlu0 %v186_v41  ;;  %v2066_v41 = vmov 0.0  }
  0xa8   :  { %v171_v43 = vmul.f32 0.03125, %v166_v42  ;;  %v177_v44 = vmul.f32 %v173_v40, %v173_v40  ;;  %1806 = vmatprep.subr.bf16.mxu1 %v2066_v41  ;;  %1818 = vmatprep.subr.bf16.mxu0 %v2066_v41 }
  0xa9   :  { %1820 = vmatprep.mubr.msk.bf16.mxu0 %vm2067_vm8, %v2066_v41 }
  0xaa   :  { %v175_v45 = vsub.f32 %v152_v26, %v171_v43  ;;  %v183_v46 = vsel %vm154_vm7, %v177_v44, 0.0  ;;  %v237_v26 = vrot.slane %v2269_v3, %v236_v25 }
  0xab   :  { %184 = vadd.xlane.f32.xlu1 %v183_v46 }
  0xac   :  { %v179_v47 = vmul.f32 %v175_v45, %v175_v45 }
  0xae   :  { %v189_v48 = vsel %vm154_vm7, %v179_v47, 0.0 }
  0xaf   :  { %190 = vadd.xlane.f32.xlu1 %v189_v48 }
 0x12f   :  { %v182_v51 = vpop.xlane.xlu0 %181 }
 0x130   :  { %v192_v52 = vmul.f32 0.03125, %v182_v51 }
 0x132   :  { %v196_v53 = vadd.f32 1e-05, %v192_v52 }
 0x134   :  { %v188_v54 = vpop.xlane.xlu0 %187  ;;  %1994 = vrsqrt.f32 %v196_v53 }
 0x135   :  { %v194_v55 = vmul.f32 0.03125, %v188_v54 }
 0x137   :  { %v198_v56 = vadd.f32 1e-05, %v194_v55 }
 0x138   :  { %v185_v57 = vpop.xlane.xlu1 %184 }
 0x139   :  { %v193_v59 = vmul.f32 0.03125, %v185_v57  ;;  %1996 = vrsqrt.f32 %v198_v56 }
 0x13b   :  { %v197_v60 = vadd.f32 1e-05, %v193_v59 }
 0x13c   :  { %v191_v61 = vpop.xlane.xlu1 %190 }
 0x13d   :  { %1998 = vrsqrt.f32 %v197_v60  ;;  %v195_v63 = vmul.f32 0.03125, %v191_v61 }
 0x13e   :  { %v1995_v2 = vpop.eup %1994 }
 0x13f   :  { %v199_v0 = vadd.f32 1e-05, %v195_v63  ;;  %v204_v4 = vmul.f32 %v1995_v2, %v172_v30 }
 0x141   :  { %2000 = vrsqrt.f32 %v199_v0  ;;  %v212_v11 = vmul.f32 %v211_v5, %v204_v4 }
 0x143   :  { %v1997_v7 = vpop.eup %1996  ;;  %v220_v16 = vadd.f32 %v219_v12, %v212_v11 }
 0x144   :  { %v206_v9 = vmul.f32 %v1997_v7, %v174_v36 }
 0x146   :  { %v214_v18 = vmul.f32 %v211_v5, %v206_v9 }
 0x147   :  { %v1999_v8 = vpop.eup %1998 }
 0x148   :  { %v205_v10 = vmul.f32 %v1999_v8, %v173_v40  ;;  %v222_v22 = vadd.f32 %v219_v12, %v214_v18 }
 0x14a   :  { %v213_v13 = vmul.f32 %v211_v5, %v205_v10 }
 0x14b   :  { %v2001_v14 = vpop.eup %2000 }
 0x14c   :  { %v207_v15 = vmul.f32 %v2001_v14, %v175_v45  ;;  %v221_v17 = vadd.f32 %v219_v12, %v213_v13 }
 0x14e   :  { %v232_v19 = vpack.c.bf16 %v221_v17, %v220_v16  ;;  %v215_v21 = vmul.f32 %v211_v5, %v207_v15 }
 0x150   :  { %1802 = vmatprep.mubr.msk.bf16.mxu1 %vm154_vm7, %v232_v19  ;;  %v223_v23 = vadd.f32 %v219_v12, %v215_v21 }
 0x152   :  { %v233_v24 = vpack.c.bf16 %v223_v23, %v222_v22 }
 0x154   :  { %1803 = vmatmul.mubr.msk.bf16.vlgmr.msra.gmra.mrb[0].mxu1 %vm154_vm7, %v233_v24 }
 0x155   :  { %1808 = vmatprep.mubr.msk.bf16.mxu1 %vm2067_vm8, %v2066_v41 }
 0x227   :  { %v1804_v27 = vpop.f32.mrb[0].mxu1 }
 0x228   :  { %v290_v28 = vpop.f32.mrb[1].mxu1  ;;  %v299_v30 = vadd.f32 %v1804_v27, %v237_v26 }
 0x229   :  { %v1805_v29 = vpop.f32.mrb[2].mxu1  ;;  %v291_v33 = vadd.f32 %v290_v28, %v237_v26 }
 0x22a   :  { %v302_v31 = vadd.f32 %v1805_v29, %v237_v26  ;;  %v293_v32 = vpop.f32.mrb[3].mxu1 }
 0x22b   :  { %v294_v34 = vadd.f32 %v293_v32, %v237_v26 }
 0x22c   :  { %v1955_v36 = vpack.i.bf16 %v302_v31, %v299_v30  ;;  %v2278_v37 = vpack.c.bf16 %v302_v31, %v299_v30 }
 0x22d   :  { %v305_v38 = vpack.c.bf16 %v294_v34, %v291_v33 }
 0x22e   :  { %1956 = vrot.lane.b32.xlu0 %v1955_v36, %s2062_s4 }
 0x22f   :  { %456 = vrot.lane.b32.xlu1 %v305_v38, %s2063_s11  ;;  %v840_v39 = vrot.slane %v305_v38, 4 }
 0x232   :  { %572 = vrot.lane.b32.xlu0 %v305_v38, %s2064_s12 }
 0x236   :  { %686 = vrot.lane.b32.xlu0 %v305_v38, %s2065_s13 }
 0x23a   :  { %949 = vrot.lane.b32.xlu0 %v840_v39, %s2063_s11 }
 0x23e   :  { %1064 = vrot.lane.b32.xlu0 %v840_v39, %s2064_s12 }
 0x242   :  { %1177 = vrot.lane.b32.xlu0 %v840_v39, %s2065_s13 }
 0x2a0   :  { %v1957_v40 = vpop.permute.xlu0 %1956 }
 0x2a1   :  { %1961 = vxpose.xlu1.b32.start.end [1/1] (short) (narrow) %v1957_v40, 32  ;;  %v457_v42 = vpop.permute.xlu1 %456 }
 0x2a4   :  { %v573_v61 = vpop.permute.xlu0 %572 }
 0x2a8   :  { %v687_v2 = vpop.permute.xlu0 %686 }
 0x2ac   :  { %v950_v10 = vpop.permute.xlu0 %949 }
 0x2b0   :  { %v1065_v13 = vpop.permute.xlu0 %1064 }
 0x2b4   :  { %v1178_v15 = vpop.permute.xlu0 %1177 }
 0x321   :  { %v1962_v43 = vpop.trf.xlu1 }
 0x322   :  { %v1963_v45 = vunpack.i.l.bf16 %v1962_v43  ;;  %v1966_v0 = vunpack.i.h.bf16 %v1962_v43 }
 0x325   :  { %v1967_v44 = vpop.trf.xlu1 }
 0x326   :  { %v1968_v46 = vunpack.i.l.bf16 %v1967_v44  ;;  %v1971_v63 = vunpack.i.h.bf16 %v1967_v44 }
 0x328   :  { %v343_v47 = vpack.c.bf16 %v1968_v46, %v1963_v45  ;;  %v838_v1 = vpack.c.bf16 %v1971_v63, %v1966_v0 }
 0x329   :  { %v1972_v48 = vpop.trf.xlu1 }
 0x32a   :  { %v351_v51 = vsel %vm349_vm9, %v343_v47, 0  ;;  %v459_v52 = vrot.slane %v343_v47, 4  ;;  %v1973_v53 = vunpack.i.l.bf16 %v1972_v48  ;;  %v845_v4 = vsel %vm349_vm9, %v838_v1, 0 }
 0x32b   :  { %1807 = vmatpush3.bf16.msra.mxu1 %v351_v51  ;;  %v952_v5 = vrot.slane %v838_v1, 4  ;;  %v1976_v6 = vunpack.i.h.bf16 %v1972_v48 }
 0x32c   :  { %v464_v54 = vsel %vm349_vm9, %v459_v52, 0  ;;  %1812 = vmatprep.subr.bf16.mxu1 %v2066_v41 }
 0x32d   :  { %v1977_v55 = vpop.trf.xlu1  ;;  %1819 = vmatpush3.bf16.msra.mxu0 %v464_v54  ;;  %v957_v8 = vsel %vm349_vm9, %v952_v5, 0 }
 0x32e   :  { %v1978_v56 = vunpack.i.l.bf16 %v1977_v55  ;;  %1809 = vmatmul.mubr.msk.bf16.vlgmr.msra.gmra.mrb[4].mxu1 %vm345_vm10, %v305_v38  ;;  %1830 = vmatprep.subr.bf16.mxu0 %v2066_v41  ;;  %v1981_v7 = vunpack.i.h.bf16 %v1977_v55 }
 0x32f   :  { %1814 = vmatprep.mubr.msk.bf16.mxu1 %vm2067_vm8, %v2066_v41 }
 0x330   :  { %v344_v57 = vpack.c.bf16 %v1978_v56, %v1973_v53  ;;  %1821 = vmatmul.mubr.msk.bf16.vlgmr.msra.gmra.mrb[0].mxu0 %vm345_vm10, %v457_v42  ;;  %v839_v9 = vpack.c.bf16 %v1981_v7, %v1976_v6 }
 0x331   :  { %1832 = vmatprep.mubr.msk.bf16.mxu0 %vm2067_vm8, %v2066_v41 }
 0x332   :  { %v578_v58 = vsel %vm349_vm9, %v344_v57, 0  ;;  %v689_v59 = vrot.slane %v344_v57, 4  ;;  %v1070_v11 = vsel %vm349_vm9, %v839_v9, 0  ;;  %v1180_v12 = vrot.slane %v839_v9, 4 }
 0x333   :  { %1831 = vmatpush3.bf16.msra.mxu0 %v578_v58 }
 0x334   :  { %1842 = vmatprep.subr.bf16.mxu0 %v2066_v41  ;;  %v694_v60 = vsel %vm349_vm9, %v689_v59, 0  ;;  %v1185_v14 = vsel %vm349_vm9, %v1180_v12, 0 }
 0x338   :  { %1833 = vmatmul.mubr.msk.bf16.vlgmr.msra.gmra.mrb[4].mxu0 %vm345_vm10, %v573_v61 }
 0x339   :  { %1843 = vmatpush3.bf16.msra.mxu0 %v694_v60  ;;  %1844 = vmatprep.mubr.msk.bf16.mxu0 %vm2067_vm8, %v2066_v41 }
 0x33a   :  { %1854 = vmatprep.subr.bf16.mxu0 %v2066_v41 }
 0x340   :  { %1845 = vmatmul.mubr.msk.bf16.vlgmr.msra.gmra.mrb[8].mxu0 %vm345_vm10, %v687_v2 }
 0x341   :  { %1855 = vmatpush3.bf16.msra.mxu0 %v845_v4  ;;  %1856 = vmatprep.mubr.msk.bf16.mxu0 %vm2067_vm8, %v2066_v41 }
 0x342   :  { %1866 = vmatprep.subr.bf16.mxu0 %v2066_v41 }
 0x348   :  { %1857 = vmatmul.mubr.msk.bf16.vlgmr.msra.gmra.mrb[12].mxu0 %vm345_vm10, %v840_v39 }
 0x349   :  { %1867 = vmatpush3.bf16.msra.mxu0 %v957_v8  ;;  %1868 = vmatprep.mubr.msk.bf16.mxu0 %vm2067_vm8, %v2066_v41 }
 0x34a   :  { %1878 = vmatprep.subr.bf16.mxu0 %v2066_v41 }
 0x350   :  { %1869 = vmatmul.mubr.msk.bf16.vlgmr.msra.gmra.mrb[16].mxu0 %vm345_vm10, %v950_v10 }
 0x351   :  { %1879 = vmatpush3.bf16.msra.mxu0 %v1070_v11  ;;  %1880 = vmatprep.mubr.msk.bf16.mxu0 %vm2067_vm8, %v2066_v41 }
 0x352   :  { %1890 = vmatprep.subr.bf16.mxu0 %v2066_v41 }
 0x358   :  { %1881 = vmatmul.mubr.msk.bf16.vlgmr.msra.gmra.mrb[20].mxu0 %vm345_vm10, %v1065_v13 }
 0x359   :  { %1891 = vmatpush3.bf16.msra.mxu0 %v1185_v14  ;;  %1892 = vmatprep.mubr.msk.bf16.mxu0 %vm2067_vm8, %v2066_v41 }
 0x35a   :  { %1902 = vmatprep.subr.bf16.mxu0 %v2066_v41 }
 0x360   :  { %1893 = vmatmul.mubr.msk.bf16.vlgmr.msra.gmra.mrb[24].mxu0 %vm345_vm10, %v1178_v15 }
 0x361   :  { %1906 = vmatprep.mubr.msk.bf16.mxu0 %vm2067_vm8, %v2066_v41 }
 0x401   :  { %v387_v16 = vpop.f32.mrb[4].mxu1 }
 0x402   :  { %v1810_v17 = vpop.f32.mrb[5].mxu1  ;;  %v393_v18 = vsel %vm345_vm10, %v387_v16, -inf }
 0x403   :  { %v390_v19 = vpop.f32.mrb[6].mxu1  ;;  %v2327_v21 = vpop.f32.mrb[0].mxu0  ;;  %394 = vmax.xlane.f32.xlu0 %v393_v18 }
 0x404   :  { %v1811_v22 = vpop.f32.mrb[7].mxu1  ;;  %v1822_v23 = vpop.f32.mrb[1].mxu0  ;;  %v506_v24 = vsel %vm345_vm10, %v2327_v21, -inf }
 0x405   :  { %507 = vmax.xlane.f32.xlu1 %v506_v24  ;;  %v503_v25 = vpop.f32.mrb[2].mxu0 }
 0x406   :  { %v1823_v26 = vpop.f32.mrb[3].mxu0 }
 0x40b   :  { %v614_v27 = vpop.f32.mrb[4].mxu0 }
 0x40c   :  { %v1834_v28 = vpop.f32.mrb[5].mxu0  ;;  %v620_v29 = vsel %vm345_vm10, %v614_v27, -inf }
 0x40d   :  { %v617_v30 = vpop.f32.mrb[6].mxu0  ;;  %621 = vmax.xlane.f32.xlu0 %v620_v29 }
 0x40e   :  { %v1835_v31 = vpop.f32.mrb[7].mxu0 }
 0x413   :  { %v730_v32 = vpop.f32.mrb[8].mxu0 }
 0x414   :  { %v1846_v33 = vpop.f32.mrb[9].mxu0  ;;  %v736_v57 = vsel %vm345_vm10, %v730_v32, -inf }
 0x415   :  { %v733_v34 = vpop.f32.mrb[10].mxu0 }
 0x416   :  { %406 = vrot.lane.b32.xlu1 %v2278_v37, %s2068_s14  ;;  %v1847_v36 = vpop.f32.mrb[11].mxu0 }
 0x41a   :  { %748 = vrot.lane.b32.xlu1 %v2278_v37, %s2069_s15 }
 0x41b   :  { %v881_v38 = vpop.f32.mrb[12].mxu0 }
 0x41c   :  { %v1858_v39 = vpop.f32.mrb[13].mxu0  ;;  %v887_v58 = vsel %vm345_vm10, %v881_v38, -inf }
 0x41d   :  { %v884_v40 = vpop.f32.mrb[14].mxu0 }
 0x41e   :  { %v1859_v42 = vpop.f32.mrb[15].mxu0 }
 0x423   :  { %518 = vrot.lane.b32.xlu0 %v2278_v37, %s2070_s16  ;;  %v993_v43 = vpop.f32.mrb[16].mxu0 }
 0x424   :  { %v1870_v44 = vpop.f32.mrb[17].mxu0  ;;  %v999_v59 = vsel %vm345_vm10, %v993_v43, -inf }
 0x425   :  { %v996_v45 = vpop.f32.mrb[18].mxu0 }
 0x426   :  { %v1871_v46 = vpop.f32.mrb[19].mxu0 }
 0x42b   :  { %v1106_v47 = vpop.f32.mrb[20].mxu0 }
 0x42c   :  { %v1882_v48 = vpop.f32.mrb[21].mxu0  ;;  %v1112_v60 = vsel %vm345_vm10, %v1106_v47, -inf }
 0x42d   :  { %v1109_v51 = vpop.f32.mrb[22].mxu0 }
 0x42e   :  { %v1883_v52 = vpop.f32.mrb[23].mxu0 }
 0x433   :  { %v2338_v53 = vpop.f32.mrb[24].mxu0 }
 0x434   :  { %v1894_v54 = vpop.f32.mrb[25].mxu0  ;;  %v1227_v61 = vsel %vm345_vm10, %v2338_v53, -inf }
 0x435   :  { %v1224_v55 = vpop.f32.mrb[26].mxu0 }
 0x436   :  { %v1895_v56 = vpop.f32.mrb[27].mxu0 }
 0x442   :  { %737 = vmax.xlane.f32.xlu0 %v736_v57 }
 0x446   :  { %888 = vmax.xlane.f32.xlu0 %v887_v58 }
 0x44a   :  { %1000 = vmax.xlane.f32.xlu0 %v999_v59 }
 0x44e   :  { %1113 = vmax.xlane.f32.xlu0 %v1112_v60 }
 0x452   :  { %1228 = vmax.xlane.f32.xlu0 %v1227_v61 }
 0x490   :  { %v395_v63 = vpop.xlane.xlu0 %394 }
 0x491   :  { %v396_v0 = vsub.f32 %v387_v16, %v395_v63 }
 0x492   :  { %v508_v1 = vpop.xlane.xlu1 %507 }
 0x493   :  { %v397_v2 = vmul.f32 1.442695, %v396_v0  ;;  %v509_v8 = vsub.f32 %v2327_v21, %v508_v1 }
 0x495   :  { %2002 = vpow2.f32 %v397_v2  ;;  %v510_v10 = vmul.f32 1.442695, %v509_v8 }
 0x496   :  { %v407_v4 = vpop.permute.xlu1 %406 }
 0x497   :  { %v412_v5 = vsel %vm349_vm9, %v407_v4, 0  ;;  %2004 = vpow2.f32 %v510_v10 }
 0x498   :  { %1813 = vmatpush3.bf16.msra.mxu1 %v412_v5 }
 0x499   :  { %1824 = vmatprep.subr.bf16.mxu1 %v2066_v41 }
 0x49a   :  { %v622_v9 = vpop.xlane.xlu0 %621  ;;  %v749_v2 = vpop.permute.xlu1 %748 }
 0x49b   :  { %v623_v11 = vsub.f32 %v614_v27, %v622_v9 }
 0x49d   :  { %v624_v12 = vmul.f32 1.442695, %v623_v11 }
 0x49e   :  { %v519_v13 = vpop.permute.xlu0 %518 }
 0x49f   :  { %v2003_v6 = vpop.eup %2002  ;;  %2006 = vpow2.f32 %v624_v12  ;;  %v524_v54 = vsel %vm349_vm9, %v519_v13, 0 }
 0x4a0   :  { %v399_v7 = vsel %vm345_vm10, %v2003_v6, 0.0 }
 0x4a1   :  { %400 = vadd.xlane.f32.xlu0 %v399_v7  ;;  %v2005_v16 = vpop.eup %2004  ;;  %v754_v7 = vsel %vm349_vm9, %v749_v2, 0 }
 0x4a2   :  { %v512_v22 = vsel %vm345_vm10, %v2005_v16, 0.0 }
 0x4a9   :  { %v2353_v23 = vpop.eup %2006 }
 0x4aa   :  { %v626_v26 = vsel %vm345_vm10, %v2353_v23, 0.0 }
 0x4b7   :  { %632 = vrot.lane.b32.xlu0 %v2278_v37, %s2071_s17 }
 0x4cf   :  { %v738_v14 = vpop.xlane.xlu0 %737 }
 0x4d0   :  { %v739_v15 = vsub.f32 %v730_v32, %v738_v14 }
 0x4d2   :  { %v740_v17 = vmul.f32 1.442695, %v739_v15 }
 0x4d3   :  { %v889_v18 = vpop.xlane.xlu0 %888 }
 0x4d4   :  { %2008 = vpow2.f32 %v740_v17  ;;  %v890_v19 = vsub.f32 %v881_v38, %v889_v18 }
 0x4d6   :  { %v891_v24 = vmul.f32 1.442695, %v890_v19  ;;  %513 = vadd.xlane.f32.xlu0 %v512_v22 }
 0x4d7   :  { %v1001_v21 = vpop.xlane.xlu0 %1000 }
 0x4d8   :  { %2010 = vpow2.f32 %v891_v24  ;;  %v1002_v25 = vsub.f32 %v993_v43, %v1001_v21 }
 0x4da   :  { %v1003_v27 = vmul.f32 1.442695, %v1002_v25  ;;  %627 = vadd.xlane.f32.xlu0 %v626_v26 }
 0x4db   :  { %v1114_v28 = vpop.xlane.xlu0 %1113 }
 0x4dc   :  { %2012 = vpow2.f32 %v1003_v27  ;;  %v1115_v29 = vsub.f32 %v1106_v47, %v1114_v28  ;;  %v899_v47 = vrot.slane %v2278_v37, 4 }
 0x4de   :  { %v2357_v30 = vpop.eup %2008  ;;  %v1116_v31 = vmul.f32 1.442695, %v1115_v29 }
 0x4df   :  { %v1229_v32 = vpop.xlane.xlu0 %1228  ;;  %v742_v33 = vsel %vm345_vm10, %v2357_v30, 0.0 }
 0x4e0   :  { %2014 = vpow2.f32 %v1116_v31  ;;  %v1230_v34 = vsub.f32 %v2338_v53, %v1229_v32  ;;  %743 = vadd.xlane.f32.xlu0 %v742_v33 }
 0x4e2   :  { %v2362_v36 = vpop.eup %2010  ;;  %v1231_v38 = vmul.f32 1.442695, %v1230_v34 }
 0x4e3   :  { %v893_v39 = vsel %vm345_vm10, %v2362_v36, 0.0 }
 0x4e4   :  { %2016 = vpow2.f32 %v1231_v38  ;;  %894 = vadd.xlane.f32.xlu0 %v893_v39 }
 0x4e6   :  { %v2366_v40 = vpop.eup %2012 }
 0x4e7   :  { %v1005_v42 = vsel %vm345_vm10, %v2366_v40, 0.0 }
 0x4e8   :  { %1006 = vadd.xlane.f32.xlu1 %v1005_v42 }
 0x4ea   :  { %v2370_v43 = vpop.eup %2014 }
 0x4eb   :  { %v1118_v44 = vsel %vm345_vm10, %v2370_v43, 0.0 }
 0x4ec   :  { %1119 = vadd.xlane.f32.xlu0 %v1118_v44 }
 0x4ee   :  { %v2374_v45 = vpop.eup %2016 }
 0x4ef   :  { %v1233_v46 = vsel %vm345_vm10, %v2374_v45, 0.0 }
 0x4f0   :  { %1234 = vadd.xlane.f32.xlu0 %v1233_v46 }
 0x4f9   :  { %1011 = vrot.lane.b32.xlu1 %v899_v47, %s2070_s16 }
 0x4fd   :  { %1124 = vrot.lane.b32.xlu1 %v899_v47, %s2071_s17 }
 0x501   :  { %1239 = vrot.lane.b32.xlu1 %v899_v47, %s2069_s15 }
 0x506   :  { %900 = vrot.lane.b32.xlu0 %v899_v47, %s2068_s14 }
 0x52e   :  { %v401_v48 = vpop.xlane.xlu0 %400 }
 0x52f   :  { %2018 = vrcp.f32 %v401_v48 }
 0x532   :  { %v633_v37 = vpop.permute.xlu0 %632 }
 0x533   :  { %v638_v63 = vsel %vm349_vm9, %v633_v37, 0 }
 0x539   :  { %v2019_v51 = vpop.eup %2018 }
 0x53a   :  { %v403_v52 = vmul.f32 %v2019_v51, %v2003_v6 }
 0x53c   :  { %v404_v53 = vpack.c.bf16 %v403_v52, %v403_v52 }
 0x53e   :  { %1815 = vmatmul.mubr.msk.bf16.vlgmr.msra.gmra.mrb[8].mxu1 %vm345_vm10, %v404_v53 }
 0x53f   :  { %1825 = vmatpush3.bf16.msra.mxu1 %v524_v54  ;;  %1826 = vmatprep.mubr.msk.bf16.mxu1 %vm2067_vm8, %v2066_v41 }
 0x540   :  { %1836 = vmatprep.subr.bf16.mxu1 %v2066_v41 }
 0x563   :  { %v514_v55 = vpop.xlane.xlu0 %513 }
 0x564   :  { %2020 = vrcp.f32 %v514_v55 }
 0x567   :  { %v628_v56 = vpop.xlane.xlu0 %627 }
 0x568   :  { %2022 = vrcp.f32 %v628_v56 }
 0x56d   :  { %v744_v57 = vpop.xlane.xlu0 %743 }
 0x56e   :  { %v2021_v58 = vpop.eup %2020  ;;  %2024 = vrcp.f32 %v744_v57 }
 0x56f   :  { %v516_v59 = vmul.f32 %v2021_v58, %v2005_v16 }
 0x571   :  { %v517_v60 = vpack.c.bf16 %v516_v59, %v516_v59  ;;  %v895_v1 = vpop.xlane.xlu0 %894 }
 0x572   :  { %v2023_v61 = vpop.eup %2022  ;;  %2026 = vrcp.f32 %v895_v1 }
 0x573   :  { %1827 = vmatmul.mubr.msk.bf16.vlgmr.msra.gmra.mrb[12].mxu1 %vm345_vm10, %v517_v60  ;;  %v630_v0 = vmul.f32 %v2023_v61, %v2353_v23 }
 0x574   :  { %1837 = vmatpush3.bf16.msra.mxu1 %v638_v63  ;;  %1838 = vmatprep.mubr.msk.bf16.mxu1 %vm2067_vm8, %v2066_v41 }
 0x575   :  { %1848 = vmatprep.subr.bf16.mxu1 %v2066_v41  ;;  %v631_v5 = vpack.c.bf16 %v630_v0, %v630_v0  ;;  %v1007_v9 = vpop.xlane.xlu1 %1006 }
 0x576   :  { %2028 = vrcp.f32 %v1007_v9 }
 0x578   :  { %v2025_v6 = vpop.eup %2024 }
 0x579   :  { %v1120_v4 = vpop.xlane.xlu0 %1119  ;;  %v746_v8 = vmul.f32 %v2025_v6, %v2357_v30  ;;  %v1012_v16 = vpop.permute.xlu1 %1011 }
 0x57a   :  { %2030 = vrcp.f32 %v1120_v4  ;;  %v1017_v19 = vsel %vm349_vm9, %v1012_v16, 0  ;;  %v1349_v16 = vsub.s32 4, %v2263_v62 }
 0x57b   :  { %1839 = vmatmul.mubr.msk.bf16.vlgmr.msra.gmra.mrb[16].mxu1 %vm345_vm10, %v631_v5  ;;  %v747_v12 = vpack.c.bf16 %v746_v8, %v746_v8 }
 0x57c   :  { %1849 = vmatpush3.bf16.msra.mxu1 %v754_v7  ;;  %1850 = vmatprep.mubr.msk.bf16.mxu1 %vm2067_vm8, %v2066_v41  ;;  %v2027_v13 = vpop.eup %2026 }
 0x57d   :  { %v1235_v10 = vpop.xlane.xlu0 %1234  ;;  %1860 = vmatprep.subr.bf16.mxu1 %v2066_v41  ;;  %v897_v15 = vmul.f32 %v2027_v13, %v2362_v36  ;;  %v1125_v23 = vpop.permute.xlu1 %1124 }
 0x57e   :  { %2032 = vrcp.f32 %v1235_v10  ;;  %v1130_v25 = vsel %vm349_vm9, %v1125_v23, 0 }
 0x57f   :  { %v898_v17 = vpack.c.bf16 %v897_v15, %v897_v15 }
 0x580   :  { %v2029_v18 = vpop.eup %2028 }
 0x581   :  { %v901_v11 = vpop.permute.xlu0 %900  ;;  %v1009_v22 = vmul.f32 %v2029_v18, %v2366_v40  ;;  %v1240_v27 = vpop.permute.xlu1 %1239 }
 0x582   :  { %v906_v14 = vsel %vm349_vm9, %v901_v11, 0  ;;  %v1245_v30 = vsel %vm349_vm9, %v1240_v27, 0 }
 0x583   :  { %1851 = vmatmul.mubr.msk.bf16.vlgmr.msra.gmra.mrb[20].mxu1 %vm345_vm10, %v747_v12  ;;  %v1010_v24 = vpack.c.bf16 %v1009_v22, %v1009_v22 }
 0x584   :  { %1861 = vmatpush3.bf16.msra.mxu1 %v906_v14  ;;  %1862 = vmatprep.mubr.msk.bf16.mxu1 %vm2067_vm8, %v2066_v41  ;;  %v2031_v21 = vpop.eup %2030 }
 0x585   :  { %1872 = vmatprep.subr.bf16.mxu1 %v2066_v41  ;;  %v1122_v26 = vmul.f32 %v2031_v21, %v2370_v43 }
 0x587   :  { %v1123_v28 = vpack.c.bf16 %v1122_v26, %v1122_v26 }
 0x588   :  { %v2033_v29 = vpop.eup %2032 }
 0x589   :  { %v1237_v31 = vmul.f32 %v2033_v29, %v2374_v45 }
 0x58b   :  { %1863 = vmatmul.mubr.msk.bf16.vlgmr.msra.gmra.mrb[24].mxu1 %vm345_vm10, %v898_v17  ;;  %v1238_v32 = vpack.c.bf16 %v1237_v31, %v1237_v31  ;;  %v1350_v17 = vrot.slane %v2269_v3, %v1349_v16 }
 0x58c   :  { %1873 = vmatpush3.bf16.msra.mxu1 %v1017_v19  ;;  %1874 = vmatprep.mubr.msk.bf16.mxu1 %vm2067_vm8, %v2066_v41 }
 0x58d   :  { %1884 = vmatprep.subr.bf16.mxu1 %v2066_v41 }
 0x593   :  { %1875 = vmatmul.mubr.msk.bf16.vlgmr.msra.gmra.mrb[28].mxu1 %vm345_vm10, %v1010_v24 }
 0x594   :  { %1885 = vmatpush3.bf16.msra.mxu1 %v1130_v25  ;;  %1886 = vmatprep.mubr.msk.bf16.mxu1 %vm2067_vm8, %v2066_v41 }
 0x595   :  { %1896 = vmatprep.subr.bf16.mxu1 %v2066_v41 }
 0x59b   :  { %1887 = vmatmul.mubr.msk.bf16.vlgmr.msra.gmra.mrb[32].mxu1 %vm345_vm10, %v1123_v28 }
 0x59c   :  { %1897 = vmatpush3.bf16.msra.mxu1 %v1245_v30  ;;  %1898 = vmatprep.mubr.msk.bf16.mxu1 %vm2067_vm8, %v2066_v41 }
 0x59d   :  { %1910 = vmatprep.subr.bf16.mxu1 %v2066_v41 }
 0x5a3   :  { %1899 = vmatmul.mubr.msk.bf16.vlgmr.msra.gmra.mrb[36].mxu1 %vm345_vm10, %v1238_v32 }
 0x5a4   :  { %1914 = vmatprep.mubr.msk.bf16.mxu1 %vm2067_vm8, %v2066_v41 }
 0x611   :  { %v448_v33 = vpop.f32.mrb[8].mxu1 }
 0x612   :  { %454 = vst.msk [vmem:[#allocation2] sm:$0xff] %vm345_vm10, %v448_v33  ;;  %v1816_v34 = vpop.f32.mrb[9].mxu1 }
 0x613   :  { %v451_v36 = vpop.f32.mrb[10].mxu1 }
 0x614   :  { %v1817_v38 = vpop.f32.mrb[11].mxu1 }
 0x646   :  { %v560_v39 = vpop.f32.mrb[12].mxu1 }
 0x647   :  { %567 = vrot.lane.b32.xlu1 %v560_v39, %s2072_s18  ;;  %v1828_v40 = vpop.f32.mrb[13].mxu1  ;;  %v1984_v39 = vld [vmem:[%s2536_s2 + $0x4] ss:$8 sps:$4 sm:$0xff]  }
 0x648   :  { %v563_v42 = vpop.f32.mrb[14].mxu1  ;;  %1911 = vmatpush3.bf16.msra.mxu1 %v1984_v39  ;;  %v1985_v40 = vld [vmem:[%s2536_s2 + $0x14] ss:$8 sps:$4 sm:$0xff]  }
 0x649   :  { %v1829_v43 = vpop.f32.mrb[15].mxu1  ;;  %1912 = vmatprep.subr.bf16.mxu1 %v2066_v41  ;;  %v1986_v42 = vld [vmem:[%s2537_s3] sm:$0xff]  }
 0x64a   :  { %v1987_v43 = vld [vmem:[%s2537_s3 + $0x8] sm:$0xff]  }
 0x64c   :  { %1913 = vmatpush3.bf16.msra.mxu1 %v1985_v40 }
 0x64e   :  { %v674_v44 = vpop.f32.mrb[16].mxu1 }
 0x64f   :  { %681 = vrot.lane.b32.xlu1 %v674_v44, %s2073_s19  ;;  %v1840_v45 = vpop.f32.mrb[17].mxu1  ;;  %v1988_v44 = vld [vmem:[%s2537_s3 + $0x10] sm:$0xff]  }
 0x650   :  { %v677_v46 = vpop.f32.mrb[18].mxu1  ;;  %v1989_v45 = vld [vmem:[%s2537_s3 + $0x18] sm:$0xff]  }
 0x651   :  { %v1841_v47 = vpop.f32.mrb[19].mxu1  ;;  %v1990_v46 = vld [vmem:[%s2537_s3 + $0x20] sm:$0xff]  }
 0x652   :  { %v1991_v47 = vld [vmem:[%s2537_s3 + $0x28] sm:$0xff]  }
 0x656   :  { %v790_v48 = vpop.f32.mrb[20].mxu1 }
 0x657   :  { %v1852_v51 = vpop.f32.mrb[21].mxu1 }
 0x658   :  { %v793_v52 = vpop.f32.mrb[22].mxu1 }
 0x659   :  { %v1853_v53 = vpop.f32.mrb[23].mxu1 }
 0x65e   :  { %v942_v54 = vpop.f32.mrb[24].mxu1 }
 0x65f   :  { %948 = vst.msk [vmem:[#allocation2 + $0x8] sm:$0xff] %vm345_vm10, %v942_v54  ;;  %v1864_v37 = vpop.f32.mrb[25].mxu1 }
 0x660   :  { %v945_v55 = vpop.f32.mrb[26].mxu1 }
 0x661   :  { %v1865_v56 = vpop.f32.mrb[27].mxu1  ;;  %v1381_v55 = vsub.s32 2, %v2263_v62 }
 0x666   :  { %v1053_v57 = vpop.f32.mrb[28].mxu1 }
 0x667   :  { %1060 = vrot.lane.b32.xlu1 %v1053_v57, %s2072_s18  ;;  %v1876_v58 = vpop.f32.mrb[29].mxu1  ;;  %v1382_v57 = vrot.slane %v2269_v3, %v1381_v55 }
 0x668   :  { %v1056_v59 = vpop.f32.mrb[30].mxu1 }
 0x669   :  { %v1877_v60 = vpop.f32.mrb[31].mxu1  ;;  %v1387_v59 = vsub.s32 3, %v2263_v62 }
 0x66b   :  { %797 = vrot.lane.b32.xlu1 %v790_v48, %s2074_s0 }
 0x66e   :  { %v1166_v61 = vpop.f32.mrb[32].mxu1 }
 0x66f   :  { %1173 = vrot.lane.b32.xlu0 %v1166_v61, %s2073_s19  ;;  %v1888_v63 = vpop.f32.mrb[33].mxu1  ;;  %1295 = vrot.lane.b32.xlu1 %v2252_v49, %s2075_s20 }
 0x670   :  { %v1169_v0 = vpop.f32.mrb[34].mxu1 }
 0x671   :  { %v1889_v1 = vpop.f32.mrb[35].mxu1  ;;  %v1388_v0 = vrot.slane %v2269_v3, %v1387_v59 }
 0x676   :  { %v1281_v2 = vpop.f32.mrb[36].mxu1 }
 0x677   :  { %1288 = vrot.lane.b32.xlu0 %v1281_v2, %s2074_s0  ;;  %v1900_v4 = vpop.f32.mrb[37].mxu1 }
 0x678   :  { %v1284_v5 = vpop.f32.mrb[38].mxu1 }
 0x679   :  { %v1901_v6 = vpop.f32.mrb[39].mxu1 }
 0x67a   :  { %v1992_v6 = vld [vmem:[%s2537_s3 + $0x30] sm:$0xff]  }
 0x67b   :  { %1297 = vrot.lane.b32.xlu0 %v2258_v50, %s2075_s20 }
 0x6b9   :  { %v568_v7 = vpop.permute.xlu1 %567 }
 0x6ba   :  { %571 = vst.msk [vmem:[#allocation2] sm:$0xff] %vm570_vm11, %v568_v7  ;;  %v1993_v7 = vld [vmem:[%s2537_s3 + $0x38] sm:$0xff]   ;;  %s2077_s3 = smov [#allocation3]  }
 0x6bb   :  { %s1704_s13 = sshll.u32 %s2077_s3, 4  ;;  %s1705_s13 = int_to_ptr.vmem [resolvable:$true] %s1704_s13 }
 0x6bc   :  { %s2038_s14 = scalar_lea.vmem %s1705_s13, 256  ;;  %p2043_p1 = scmp.lt.s32.totalorder %s1705_s13, %s1705_s13 }
 0x6bd   :  { %p2039_p0 = scmp.ne.s32.totalorder %s1705_s13, %s2038_s14  ;;  %p2044_p2 = scmp.lt.s32.totalorder %s2038_s14, %s2038_s14 }
 0x6bf   :  { %p2045_p3 = por %p2044_p2, %p2043_p1 }
 0x6c1   :  { %v682_v8 = vpop.permute.xlu1 %681  ;;  %p2046_p4 = pnand %p2045_p3, %p2039_p0 }
 0x6c2   :  { %685 = vst.msk [vmem:[#allocation2] sm:$0xff] %vm684_vm12, %v682_v8  ;;  %v1394_v8 = vsub.s32 7, %v2263_v62 }
 0x6d9   :  { %v1061_v9 = vpop.permute.xlu1 %1060 }
 0x6da   :  { %1063 = vst.msk [vmem:[#allocation2 + $0x8] sm:$0xff] %vm570_vm11, %v1061_v9  ;;  %v1395_v9 = vrot.slane %v2269_v3, %v1394_v8 }
 0x6dd   :  { %v798_v49 = vpop.permute.xlu1 %797 }
 0x6de   :  { %801 = vst.msk [vmem:[#allocation2] sm:$0xff] %vm800_vm13, %v798_v49 }
 0x6e1   :  { %v1174_v10 = vpop.permute.xlu0 %1173  ;;  %v1296_v11 = vpop.permute.xlu1 %1295 }
 0x6e2   :  { %1176 = vst.msk [vmem:[#allocation2 + $0x8] sm:$0xff] %vm684_vm12, %v1174_v10  ;;  %1903 = vmatpush3.bf16.msra.mxu0 %v1296_v11 }
 0x6e3   :  { %1904 = vmatprep.subr.bf16.mxu0 %v2066_v41 }
 0x6e5   :  { %v1292_v13 = vld [vmem:[#allocation2] sm:$0xff] }
 0x6e9   :  { %v1289_v12 = vpop.permute.xlu0 %1288 }
 0x6ea   :  { %1291 = vst.msk [vmem:[#allocation2 + $0x8] sm:$0xff] %vm800_vm13, %v1289_v12 }
 0x6ed   :  { %v1298_v50 = vpop.permute.xlu0 %1297 }
 0x6ee   :  { %1905 = vmatpush3.bf16.msra.mxu0 %v1298_v50 }
 0x6ef   :  { %1918 = vmatprep.subr.bf16.mxu0 %v2066_v41 }
 0x6f1   :  { %v1293_v14 = vld [vmem:[#allocation2 + $0x8] sm:$0xff] }
 0x6f2   :  { %v1294_v15 = vpack.c.bf16 %v1293_v14, %v1292_v13 }
 0x6f4   :  { %1907 = vmatmul.mubr.msk.bf16.vlgmr.msra.gmra.mrb[28].mxu0 %vm154_vm7, %v1294_v15 }
 0x6f5   :  { %1934 = vmatprep.mubr.msk.bf16.mxu0 %vm2067_vm8, %v2066_v41  ;;  %1919 = vmatpush3.bf16.msra.mxu0 %v1986_v42 }
 0x6f6   :  { %1920 = vmatprep.subr.bf16.mxu0 %v2066_v41 }
 0x6f9   :  { %1921 = vmatpush3.bf16.msra.mxu0 %v1987_v43 }
 0x6fa   :  { %1922 = vmatprep.subr.bf16.mxu0 %v2066_v41 }
 0x6fd   :  { %1923 = vmatpush3.bf16.msra.mxu0 %v1988_v44 }
 0x6fe   :  { %1924 = vmatprep.subr.bf16.mxu0 %v2066_v41 }
 0x701   :  { %1925 = vmatpush3.bf16.msra.mxu0 %v1989_v45 }
 0x702   :  { %1926 = vmatprep.subr.bf16.mxu0 %v2066_v41 }
 0x705   :  { %1927 = vmatpush3.bf16.msra.mxu0 %v1990_v46 }
 0x706   :  { %1928 = vmatprep.subr.bf16.mxu0 %v2066_v41 }
 0x709   :  { %1929 = vmatpush3.bf16.msra.mxu0 %v1991_v47 }
 0x70a   :  { %1930 = vmatprep.subr.bf16.mxu0 %v2066_v41 }
 0x70d   :  { %1931 = vmatpush3.bf16.msra.mxu0 %v1992_v6 }
 0x70e   :  { %1932 = vmatprep.subr.bf16.mxu0 %v2066_v41  ;;  %v1473_v41 = vsub.s32 5, %v2263_v62 }
 0x711   :  { %1933 = vmatpush3.bf16.msra.mxu0 %v1993_v7 }
 0x7c7   :  { %v1338_v18 = vpop.f32.mrb[28].mxu0 }
 0x7c8   :  { %v1345_v19 = vadd.f32 %v1338_v18, %v2167_v35  ;;  %v1908_v22 = vpop.f32.mrb[29].mxu0 }
 0x7c9   :  { %v1341_v23 = vpop.f32.mrb[30].mxu0 }
 0x7ca   :  { %v2441_v24 = vadd.f32 %v1350_v17, %v1345_v19  ;;  %v1346_v21 = vadd.f32 %v1341_v23, %v2233_v20  ;;  %v1909_v25 = vpop.f32.mrb[31].mxu0  ;;  %v1474_v19 = vrot.slane %v2269_v3, %v1473_v41 }
 0x7cc   :  { %v2444_v26 = vadd.f32 %v1350_v17, %v1346_v21  ;;  %v1353_v27 = vsel %vm154_vm7, %v2441_v24, 0.0  ;;  %v2076_v17 = vmov 1966171168  }
 0x7cd   :  { %1354 = vadd.xlane.f32.xlu1 %v1353_v27  ;;  %v1569_v18 = vunpack.c.l.s4 %v2076_v17 }
 0x7ce   :  { %v1356_v28 = vsel %vm154_vm7, %v2444_v26, 0.0 }
 0x7cf   :  { %1357 = vadd.xlane.f32.xlu0 %v1356_v28  ;;  %v1570_v22 = vunpack.c.0.s8 %v1569_v18 }
 0x7d1   :  { %v1573_v25 = vsub.s32 %v1570_v22, %v2263_v62 }
 0x85a   :  { %v1355_v29 = vpop.xlane.xlu1 %1354 }
 0x85b   :  { %v1359_v30 = vmul.f32 0.03125, %v1355_v29 }
 0x85c   :  { %v1358_v35 = vpop.xlane.xlu0 %1357 }
 0x85d   :  { %v1361_v31 = vsub.f32 %v2441_v24, %v1359_v30  ;;  %v1360_v32 = vmul.f32 0.03125, %v1358_v35 }
 0x85f   :  { %v1362_v33 = vsub.f32 %v2444_v26, %v1360_v32  ;;  %v1363_v20 = vmul.f32 %v1361_v31, %v1361_v31 }
 0x861   :  { %v1365_v34 = vsel %vm154_vm7, %v1363_v20, 0.0  ;;  %v1364_v36 = vmul.f32 %v1362_v33, %v1362_v33 }
 0x862   :  { %1366 = vadd.xlane.f32.xlu0 %v1365_v34 }
 0x863   :  { %v1368_v38 = vsel %vm154_vm7, %v1364_v36, 0.0 }
 0x866   :  { %1369 = vadd.xlane.f32.xlu0 %v1368_v38 }
 0x8ef   :  { %v1367_v48 = vpop.xlane.xlu0 %1366 }
 0x8f0   :  { %v1371_v51 = vmul.f32 0.03125, %v1367_v48 }
 0x8f2   :  { %v1373_v52 = vadd.f32 1e-05, %v1371_v51 }
 0x8f3   :  { %v1370_v53 = vpop.xlane.xlu0 %1369 }
 0x8f4   :  { %2034 = vrsqrt.f32 %v1373_v52  ;;  %v1372_v54 = vmul.f32 0.03125, %v1370_v53 }
 0x8f6   :  { %v1374_v37 = vadd.f32 1e-05, %v1372_v54 }
 0x8f8   :  { %2036 = vrsqrt.f32 %v1374_v37 }
 0x8fe   :  { %v2035_v56 = vpop.eup %2034 }
 0x8ff   :  { %v1377_v58 = vmul.f32 %v2035_v56, %v1361_v31 }
 0x901   :  { %v1383_v61 = vmul.f32 %v1382_v57, %v1377_v58 }
 0x902   :  { %v2037_v60 = vpop.eup %2036 }
 0x903   :  { %v1378_v63 = vmul.f32 %v2037_v60, %v1362_v33  ;;  %v1389_v2 = vadd.f32 %v1388_v0, %v1383_v61 }
 0x905   :  { %v1384_v1 = vmul.f32 %v1382_v57, %v1378_v63 }
 0x907   :  { %v1390_v4 = vadd.f32 %v1388_v0, %v1384_v1 }
 0x909   :  { %v1391_v5 = vpack.c.bf16 %v1390_v4, %v1389_v2 }
 0x90b   :  { %1915 = vmatmul.mubr.msk.bf16.vlgmr.msra.gmra.mrb[40].mxu1 %vm154_vm7, %v1391_v5 }
 0x9de   :  { %v1445_v49 = vpop.f32.mrb[40].mxu1 }
 0x9df   :  { %v1446_v10 = vadd.f32 %v1445_v49, %v1395_v9  ;;  %v1916_v11 = vpop.f32.mrb[41].mxu1 }
 0x9e0   :  { %v1448_v12 = vpop.f32.mrb[42].mxu1 }
 0x9e1   :  { %v1449_v50 = vadd.f32 %v1448_v12, %v1395_v9  ;;  %v1917_v13 = vpop.f32.mrb[43].mxu1  ;;  %v1452_v14 = vmax.f32 %v1446_v10, 0.0 }
 0x9e3   :  { %v1453_v15 = vmax.f32 %v1449_v50, 0.0 }
 0x9e5   :  { %v1454_v16 = vpack.c.bf16 %v1453_v15, %v1452_v14 }
 0x9e7   :  { %1935 = vmatmul.mubr.bf16.vlgmr.msra.gmra.mrb[32].mxu0 %v1454_v16 }
 0xaba   :  { %v1557_v23 = vpop.f32.mrb[32].mxu0 }
 0xabb   :  { %v1558_v21 = vadd.f32 %v1557_v23, %v1474_v19  ;;  %v1936_v27 = vpop.f32.mrb[33].mxu0 }
 0xabc   :  { %v1560_v28 = vpop.f32.mrb[34].mxu0 }
 0xabd   :  { %v1564_v29 = vadd.f32 %v1558_v21, %v2441_v24  ;;  %v1561_v30 = vadd.f32 %v1560_v28, %v1474_v19  ;;  %v1937_v35 = vpop.f32.mrb[35].mxu0 }
 0xabf   :  { %v1567_v31 = vcombine.high %v1564_v29, %v1564_v29  ;;  %v1574_v32 = vrot.slane %v1564_v29, %v1573_v25  ;;  %v1565_v33 = vadd.f32 %v1561_v30, %v2444_v26 }
 0xac1   :  { %v1581_v20 = vrot.slane %v1567_v31, %v1573_v25  ;;  %v1582_v34 = vcombine.high %v1574_v32, %v1574_v32  ;;  %v1590_v36 = vrot.slane %v1574_v32, %v1573_v25  ;;  %v1634_v3 = vcombine.high %v1565_v33, %v1565_v33 }
 0xac2   :  { %v1641_v38 = vrot.slane %v1565_v33, %v1573_v25 }
 0xac3   :  { %v1583_v39 = vcombine.high %v1581_v20, %v1581_v20  ;;  %v1597_v40 = vrot.slane %v1581_v20, %v1573_v25  ;;  %v1604_v42 = vrot.slane %v1582_v34, %v1573_v25  ;;  %v1612_v62 = vcombine.high %v1590_v36, %v1590_v36  ;;  %1625 = vst.msk [vmem:[#allocation3] sm:$0x1] %vm1624_vm14, %v1590_v36 }
 0xac4   :  { %v1648_v43 = vrot.slane %v1634_v3, %v1573_v25  ;;  %v1649_v24 = vcombine.high %v1641_v38, %v1641_v38  ;;  %v1657_v44 = vrot.slane %v1641_v38, %v1573_v25 }
 0xac5   :  { %v1611_v45 = vrot.slane %v1583_v39, %v1573_v25  ;;  %v1613_v46 = vcombine.high %v1597_v40, %v1597_v40  ;;  %v1614_v47 = vcombine.high %v1604_v42, %v1604_v42  ;;  %1626 = vst.msk [vmem:[#allocation3 + $0x2] sm:$0x1] %vm1624_vm14, %v1604_v42  ;;  %1627 = vst.msk [vmem:[#allocation3 + $0x4] sm:$0x1] %vm1624_vm14, %v1612_v62 }
 0xac6   :  { %1629 = vst.msk [vmem:[#allocation3 + $0x8] sm:$0x1] %vm1624_vm14, %v1597_v40  ;;  %v1650_v26 = vcombine.high %v1648_v43, %v1648_v43  ;;  %v1664_v48 = vrot.slane %v1648_v43, %v1573_v25  ;;  %v1671_v51 = vrot.slane %v1649_v24, %v1573_v25  ;;  %v1679_v52 = vcombine.high %v1657_v44, %v1657_v44 }
 0xac7   :  { %1691 = vst.msk [vmem:[#allocation3 + $0x1] sm:$0x1] %vm1624_vm14, %v1657_v44  ;;  %v1615_v53 = vcombine.high %v1611_v45, %v1611_v45  ;;  %1628 = vst.msk [vmem:[#allocation3 + $0x6] sm:$0x1] %vm1624_vm14, %v1614_v47 }
 0xac8   :  { %1630 = vst.msk [vmem:[#allocation3 + $0xa] sm:$0x1] %vm1624_vm14, %v1611_v45  ;;  %1631 = vst.msk [vmem:[#allocation3 + $0xc] sm:$0x1] %vm1624_vm14, %v1613_v46  ;;  %v1678_v54 = vrot.slane %v1650_v26, %v1573_v25  ;;  %v1680_v37 = vcombine.high %v1664_v48, %v1664_v48  ;;  %v1681_v55 = vcombine.high %v1671_v51, %v1671_v51 }
 0xac9   :  { %1692 = vst.msk [vmem:[#allocation3 + $0x3] sm:$0x1] %vm1624_vm14, %v1671_v51  ;;  %1693 = vst.msk [vmem:[#allocation3 + $0x5] sm:$0x1] %vm1624_vm14, %v1679_v52 }
 0xaca   :  { %1695 = vst.msk [vmem:[#allocation3 + $0x9] sm:$0x1] %vm1624_vm14, %v1664_v48  ;;  %1632 = vst.msk [vmem:[#allocation3 + $0xe] sm:$0x1] %vm1624_vm14, %v1615_v53  ;;  %v1682_v56 = vcombine.high %v1678_v54, %v1678_v54 }
 0xacb   :  { %1694 = vst.msk [vmem:[#allocation3 + $0x7] sm:$0x1] %vm1624_vm14, %v1681_v55  ;;  %1696 = vst.msk [vmem:[#allocation3 + $0xb] sm:$0x1] %vm1624_vm14, %v1678_v54 }
 0xacc   :  { %1697 = vst.msk [vmem:[#allocation3 + $0xd] sm:$0x1] %vm1624_vm14, %v1680_v37  ;;  %1698 = vst.msk [vmem:[#allocation3 + $0xf] sm:$0x1] %vm1624_vm14, %v1682_v56 }
 0xacd   :  { %2049 = shalt.err (!%p2046_p4)
}
 0xace   :  { %s2050_s17 = scalar_lea.hbm %s2539_s5, 256 }
 0xacf   :  { %p2051_p5 = scmp.ne.s32.totalorder %s2539_s5, %s2050_s17  ;;  %p2054_p6 = scmp.lt.u32.totalorder %s2050_s17, %s2539_s5 }
 0xad1   :  { %p2056_p7 = pnand %p2054_p6, %p2051_p5 }
 0xad3   :  { %2059 = shalt.err (!%p2056_p7)
}
 0xad4   :  { %s2078_s22 = smov 2  }
 0xad5   :  { %1710 = dma.vmem_to_hbm [thread:$0]  %s1705_s13, 256, %s2539_s5, [#allocation4], %s2075_s20, %s2075_s20, %s2078_s22  }
 0xad6   :  { %2060 = dma.done.wait [#allocation4], 256  }
 0xad7   :  { %2061 = vsyncadd [#allocation4], 4294967040 }
 0xad8   :  { %1714 = vsyncpa [#allocation4], 1 }

</bundles_post_ra>
